<compile_context>
chip_gen: v7x
topology: tpu7x:2x2x1
jax: 0.10.0
libtpu: 0.0.40
codegen_flags: <defaults>
</compile_context>

<pallas_src>
import functools

import jax
import jax.numpy as jnp
from jax.experimental import pallas as pl
from jax.experimental.pallas import tpu as pltpu


def _round_up(x, m):
    return ((x + m - 1) // m) * m


def _mlp_kernel(x_ref, w1_ref, b1_ref, w2_ref, b2_ref, w3_ref, b3_ref, o_ref):
    # x_ref: (TB, n_in_p) bf16 (streamed)
    # w1: (n_in_p, 2048) bf16   b1: (1, 2048) bf16
    # w2: (2048, 512)   bf16    b2: (1, 512)  bf16
    # w3: (512, n_cls_p) bf16   b3: (1, n_cls_p) f32
    # o_ref: (TB, n_cls_p) f32 (lane-dense store)
    h1 = jnp.dot(x_ref[...], w1_ref[...], preferred_element_type=jnp.float32)
    h1 = jnp.maximum(h1.astype(jnp.bfloat16) + b1_ref[...], 0)   # bf16 epilogue

    h2 = jnp.dot(h1, w2_ref[...], preferred_element_type=jnp.float32)
    h2 = jnp.maximum(h2.astype(jnp.bfloat16) + b2_ref[...], 0)   # bf16 epilogue

    out = jnp.dot(h2, w3_ref[...], preferred_element_type=jnp.float32) + b3_ref[...]
    o_ref[...] = out.astype(o_ref.dtype)


def _pad2(a, rows, cols, dtype):
    """Zero-pad a 2-D array up to (rows, cols) and cast."""
    r, c = a.shape
    return jnp.pad(a, ((0, rows - r), (0, cols - c))).astype(dtype)


@functools.partial(jax.jit, static_argnames=("batch_tile",))
def discriminator_forward(x, params, *, batch_tile=512):
    """x: (B, n_input) float32.  Returns (B, num_classes) float32."""
    w1, b1, w2, b2, w3, b3 = params
    n_in, h1_dim = w1.shape          # (n_input, 2000)
    h2_dim = w2.shape[1]             # 500
    n_cls = w3.shape[1]              # num_classes
    B = x.shape[0]

    # ---- padded feature dims ------------------------------------------------
    # Layer-1 contraction dim only needs bf16 sublane alignment (block == full
    # array dim, so no 128 requirement); hidden/output dims stay lane-dense.
    n_in_p = _round_up(max(n_in, 1), 16)
    h1_p = _round_up(h1_dim, 128)          # 2000 -> 2048
    h2_p = _round_up(h2_dim, 128)          # 500  -> 512
    n_cls_p = _round_up(max(n_cls, 1), 128)

    # ---- batch tiling ---------------------------------------------------------
    # Minimize last-tile zero padding; ensure >= 2 tiles for moderate batches
    # so both TensorCores on v7x get work.
    n_tiles = max(pl.cdiv(B, batch_tile), 1)
    if n_tiles == 1 and B >= 256:
        n_tiles = 2
    tb = _round_up(pl.cdiv(B, n_tiles), 16)
    b_pad = _round_up(B, tb)

    # ---- pad / cast operands (zero-padded cols/rows + ReLU(0)==0 keep the
    #      real outputs unchanged) ---------------------------------------------
    x_p = jnp.pad(x, ((0, b_pad - B), (0, n_in_p - n_in))).astype(jnp.bfloat16)
    w1_p = _pad2(w1, n_in_p, h1_p, jnp.bfloat16)
    b1_p = _pad2(b1, 1, h1_p, jnp.bfloat16)
    w2_p = _pad2(w2, h1_p, h2_p, jnp.bfloat16)
    b2_p = _pad2(b2, 1, h2_p, jnp.bfloat16)
    w3_p = _pad2(w3, h2_p, n_cls_p, jnp.bfloat16)
    b3_p = _pad2(b3, 1, n_cls_p, jnp.float32)

    grid = (b_pad // tb,)

    flops = 2 * b_pad * (n_in_p * h1_p + h1_p * h2_p + h2_p * n_cls_p)
    bytes_accessed = (
        x_p.size * 2
        + (w1_p.size + b1_p.size + w2_p.size + b2_p.size + w3_p.size) * 2
        + b3_p.size * 4
        + b_pad * n_cls_p * 4
    )

    # Grid-invariant blocks: single-buffer them (no re-DMA across steps anyway).
    resident = dict(pipeline_mode=pl.Buffered(1))

    out = pl.pallas_call(
        _mlp_kernel,
        out_shape=jax.ShapeDtypeStruct((b_pad, n_cls_p), jnp.float32),
        grid_spec=pltpu.PrefetchScalarGridSpec(
            num_scalar_prefetch=0,
            grid=grid,
            in_specs=[
                pl.BlockSpec((tb, n_in_p), lambda i: (i, 0)),             # x tile (bf16)
                pl.BlockSpec((n_in_p, h1_p), lambda i: (0, 0), **resident),
                pl.BlockSpec((1, h1_p), lambda i: (0, 0), **resident),
                pl.BlockSpec((h1_p, h2_p), lambda i: (0, 0), **resident),
                pl.BlockSpec((1, h2_p), lambda i: (0, 0), **resident),
                pl.BlockSpec((h2_p, n_cls_p), lambda i: (0, 0), **resident),
                pl.BlockSpec((1, n_cls_p), lambda i: (0, 0), **resident),
            ],
            out_specs=pl.BlockSpec((tb, n_cls_p), lambda i: (i, 0)),      # lane-dense out
        ),
        compiler_params=pltpu.CompilerParams(
            dimension_semantics=("parallel",),
            vmem_limit_bytes=48 * 1024 * 1024,
        ),
        cost_estimate=pl.CostEstimate(
            flops=flops, transcendentals=0, bytes_accessed=bytes_accessed
        ),
    )(x_p, w1_p, b1_p, w2_p, b2_p, w3_p, b3_p)

    return out[:B, :n_cls]


def init_params(key, n_input=2, num_classes=1):
    """Deterministic synthetic parameters (stored as (in, out) matrices, f32)."""
    k1, k2, k3, k4, k5, k6 = jax.random.split(key, 6)

    def _layer(kw, kb, fan_in, fan_out):
        # Kaiming-uniform-ish bound like torch's default Linear init.
        bound = 1.0 / jnp.sqrt(float(fan_in))
        w = jax.random.uniform(kw, (fan_in, fan_out), jnp.float32, -bound, bound)
        b = jax.random.uniform(kb, (1, fan_out), jnp.float32, -bound, bound)
        return w, b

    w1, b1 = _layer(k1, k2, n_input, 2000)
    w2, b2 = _layer(k3, k4, 2000, 500)
    w3, b3 = _layer(k5, k6, 500, num_classes)
    return (w1, b1, w2, b2, w3, b3)


def _reference_forward(x, params):
    w1, b1, w2, b2, w3, b3 = params
    h = jnp.maximum(x @ w1 + b1, 0.0)
    h = jnp.maximum(h @ w2 + b2, 0.0)
    return h @ w3 + b3


if __name__ == "__main__":
    key = jax.random.PRNGKey(0)
    kp, kx1, kx2 = jax.random.split(key, 3)

    n_input, num_classes = 2, 1
    params = init_params(kp, n_input=n_input, num_classes=num_classes)

    # Small-shape check (matches module defaults): batch=2, n_input=2.
    x_small = jax.random.normal(kx1, (2, n_input), jnp.float32)
    out_small = jax.block_until_ready(discriminator_forward(x_small, params))
    ref_small = _reference_forward(x_small, params)
    assert out_small.shape == (2, num_classes), out_small.shape
    # bf16 weights/activations + bf16 bias-add (f32 MXU accumulation) vs f32 ref.
    assert jnp.allclose(out_small, ref_small, atol=3e-2, rtol=3e-2), (out_small, ref_small)

    # Moderate batch: exercises the multi-tile (>= 2 grid steps) path.
    x_big = jax.random.normal(kx2, (300, n_input), jnp.float32)
    out_big = jax.block_until_ready(discriminator_forward(x_big, params))
    ref_big = _reference_forward(x_big, params)
    assert out_big.shape == (300, num_classes), out_big.shape
    assert jnp.allclose(out_big, ref_big, atol=3e-2, rtol=3e-2)

    print("KERNEL_OK")
</pallas_src>

<mosaic_0001>
module attributes {stable_mosaic.version = 11 : i64} {
  func.func @_mlp_kernel(%arg0: i32, %arg1: memref<16x16xbf16, #tpu.memory_space<vmem>>, %arg2: memref<16x2048xbf16, #tpu.memory_space<vmem>>, %arg3: memref<1x2048xbf16, #tpu.memory_space<vmem>>, %arg4: memref<2048x512xbf16, #tpu.memory_space<vmem>>, %arg5: memref<1x512xbf16, #tpu.memory_space<vmem>>, %arg6: memref<512x128xbf16, #tpu.memory_space<vmem>>, %arg7: memref<1x128xf32, #tpu.memory_space<vmem>>, %arg8: memref<16x128xf32, #tpu.memory_space<vmem>>) attributes {dimension_semantics = [#tpu.dimension_semantics<parallel>], iteration_bounds = array<i64: 1>, scalar_prefetch = 0 : i64, scratch_operands = 0 : i64, tpu.core_type = #tpu.core_type<tc>, window_params = [{transform_indices = @transform_0, window_bounds = array<i64: 16, 16>}, {pipeline_mode = #tpu.pipeline_mode<synchronous>, transform_indices = @transform_1, window_bounds = array<i64: 16, 2048>}, {pipeline_mode = #tpu.pipeline_mode<synchronous>, transform_indices = @transform_2, window_bounds = array<i64: 1, 2048>}, {pipeline_mode = #tpu.pipeline_mode<synchronous>, transform_indices = @transform_3, window_bounds = array<i64: 2048, 512>}, {pipeline_mode = #tpu.pipeline_mode<synchronous>, transform_indices = @transform_4, window_bounds = array<i64: 1, 512>}, {pipeline_mode = #tpu.pipeline_mode<synchronous>, transform_indices = @transform_5, window_bounds = array<i64: 512, 128>}, {pipeline_mode = #tpu.pipeline_mode<synchronous>, transform_indices = @transform_6, window_bounds = array<i64: 1, 128>}, {transform_indices = @transform_7, window_bounds = array<i64: 16, 128>}]} {
    %c0 = arith.constant 0 : index
    %c0_0 = arith.constant 0 : index
    %0 = vector.load %arg1[%c0, %c0_0] : memref<16x16xbf16, #tpu.memory_space<vmem>>, vector<16x16xbf16>
    %c0_1 = arith.constant 0 : index
    %c0_2 = arith.constant 0 : index
    %1 = vector.load %arg2[%c0_1, %c0_2] : memref<16x2048xbf16, #tpu.memory_space<vmem>>, vector<16x2048xbf16>
    %cst = arith.constant dense<0.000000e+00> : vector<16x2048xf32>
    %2 = tpu.matmul %0, %1, %cst {dimension_numbers = #tpu.dot_dimension_numbers<[1], [0], [0], [1], [0, 0, 1, 1], [], []>} : vector<16x16xbf16>, vector<16x2048xbf16>, vector<16x2048xf32> -> vector<16x2048xf32>
    %3 = arith.truncf %2 : vector<16x2048xf32> to vector<16x2048xbf16>
    %c0_3 = arith.constant 0 : index
    %c0_4 = arith.constant 0 : index
    %4 = vector.load %arg3[%c0_3, %c0_4] : memref<1x2048xbf16, #tpu.memory_space<vmem>>, vector<1x2048xbf16>
    %5 = vector.broadcast %4 : vector<1x2048xbf16> to vector<16x2048xbf16>
    %6 = arith.addf %3, %5 : vector<16x2048xbf16>
    %cst_5 = arith.constant 0.000000e+00 : bf16
    %7 = vector.broadcast %cst_5 : bf16 to vector<16x2048xbf16>
    %8 = arith.maximumf %6, %7 : vector<16x2048xbf16>
    %c0_6 = arith.constant 0 : index
    %c0_7 = arith.constant 0 : index
    %9 = vector.load %arg4[%c0_6, %c0_7] : memref<2048x512xbf16, #tpu.memory_space<vmem>>, vector<2048x512xbf16>
    %cst_8 = arith.constant dense<0.000000e+00> : vector<16x512xf32>
    %10 = tpu.matmul %8, %9, %cst_8 {dimension_numbers = #tpu.dot_dimension_numbers<[1], [0], [0], [1], [0, 0, 1, 1], [], []>} : vector<16x2048xbf16>, vector<2048x512xbf16>, vector<16x512xf32> -> vector<16x512xf32>
    %11 = arith.truncf %10 : vector<16x512xf32> to vector<16x512xbf16>
    %c0_9 = arith.constant 0 : index
    %c0_10 = arith.constant 0 : index
    %12 = vector.load %arg5[%c0_9, %c0_10] : memref<1x512xbf16, #tpu.memory_space<vmem>>, vector<1x512xbf16>
    %13 = vector.broadcast %12 : vector<1x512xbf16> to vector<16x512xbf16>
    %14 = arith.addf %11, %13 : vector<16x512xbf16>
    %cst_11 = arith.constant 0.000000e+00 : bf16
    %15 = vector.broadcast %cst_11 : bf16 to vector<16x512xbf16>
    %16 = arith.maximumf %14, %15 : vector<16x512xbf16>
    %c0_12 = arith.constant 0 : index
    %c0_13 = arith.constant 0 : index
    %17 = vector.load %arg6[%c0_12, %c0_13] : memref<512x128xbf16, #tpu.memory_space<vmem>>, vector<512x128xbf16>
    %cst_14 = arith.constant dense<0.000000e+00> : vector<16x128xf32>
    %18 = tpu.matmul %16, %17, %cst_14 {dimension_numbers = #tpu.dot_dimension_numbers<[1], [0], [0], [1], [0, 0, 1, 1], [], []>} : vector<16x512xbf16>, vector<512x128xbf16>, vector<16x128xf32> -> vector<16x128xf32>
    %c0_15 = arith.constant 0 : index
    %c0_16 = arith.constant 0 : index
    %19 = vector.load %arg7[%c0_15, %c0_16] : memref<1x128xf32, #tpu.memory_space<vmem>>, vector<1x128xf32>
    %20 = vector.broadcast %19 : vector<1x128xf32> to vector<16x128xf32>
    %21 = arith.addf %18, %20 : vector<16x128xf32>
    %c0_17 = arith.constant 0 : index
    %c0_18 = arith.constant 0 : index
    %22 = vector.load %arg8[%c0_17, %c0_18] : memref<16x128xf32, #tpu.memory_space<vmem>>, vector<16x128xf32>
    tpu.vector_store %arg8[%c0_17, %c0_18], %21 {strides = array<i32>} : memref<16x128xf32, #tpu.memory_space<vmem>>, vector<16x128xf32>,
    return
  }
  func.func @transform_0(%arg0: i32) -> (i32, i32) {
    %c0_i32 = arith.constant 0 : i32
    %c0_i32_0 = arith.constant 0 : i32
    return %arg0, %c0_i32 : i32, i32
  }
  func.func @transform_1(%arg0: i32) -> (i32, i32) {
    %c0_i32 = arith.constant 0 : i32
    %c0_i32_0 = arith.constant 0 : i32
    %c0_i32_1 = arith.constant 0 : i32
    return %c0_i32, %c0_i32_0 : i32, i32
  }
  func.func @transform_2(%arg0: i32) -> (i32, i32) {
    %c0_i32 = arith.constant 0 : i32
    %c0_i32_0 = arith.constant 0 : i32
    %c0_i32_1 = arith.constant 0 : i32
    return %c0_i32, %c0_i32_0 : i32, i32
  }
  func.func @transform_3(%arg0: i32) -> (i32, i32) {
    %c0_i32 = arith.constant 0 : i32
    %c0_i32_0 = arith.constant 0 : i32
    %c0_i32_1 = arith.constant 0 : i32
    return %c0_i32, %c0_i32_0 : i32, i32
  }
  func.func @transform_4(%arg0: i32) -> (i32, i32) {
    %c0_i32 = arith.constant 0 : i32
    %c0_i32_0 = arith.constant 0 : i32
    %c0_i32_1 = arith.constant 0 : i32
    return %c0_i32, %c0_i32_0 : i32, i32
  }
  func.func @transform_5(%arg0: i32) -> (i32, i32) {
    %c0_i32 = arith.constant 0 : i32
    %c0_i32_0 = arith.constant 0 : i32
    %c0_i32_1 = arith.constant 0 : i32
    return %c0_i32, %c0_i32_0 : i32, i32
  }
  func.func @transform_6(%arg0: i32) -> (i32, i32) {
    %c0_i32 = arith.constant 0 : i32
    %c0_i32_0 = arith.constant 0 : i32
    %c0_i32_1 = arith.constant 0 : i32
    return %c0_i32, %c0_i32_0 : i32, i32
  }
  func.func @transform_7(%arg0: i32) -> (i32, i32) {
    %c0_i32 = arith.constant 0 : i32
    %c0_i32_0 = arith.constant 0 : i32
    return %arg0, %c0_i32 : i32, i32
  }
}

</mosaic_0001>

<bundles_post_ra>
// kernel: discriminator_forward.1
= control target key start
LH: loop header
LB: loop body
LE: loop exit
PB: predicated region body
PF: predicated region fallthrough
CT: control target
= control target key end

     0   :  { %v6393_v2 = vmov 0   ;;  %vm130_vm0 = vcmask 130048   ;;  %s8306_s1 = inlined_call_operand.vmem [shape: bf16[16,2048], index: 1, kind: input, shape index: {}]   ;;  %s8307_s0 = inlined_call_operand.vmem [shape: bf16[16,16], index: 0, kind: input, shape index: {}]   ;;  %s8308_s3 = inlined_call_operand.vmem [shape: bf16[2048,512], index: 3, kind: input, shape index: {}]   ;;  %s8309_s2 = inlined_call_operand.vmem [shape: bf16[1,2048], index: 2, kind: input, shape index: {}]   ;;  %s8310_s5 = inlined_call_operand.vmem [shape: bf16[512,128], index: 5, kind: input, shape index: {}]   ;;  %s8311_s4 = inlined_call_operand.vmem [shape: bf16[1,512], index: 4, kind: input, shape index: {}]   ;;  %s8312_s6 = inlined_call_operand.vmem [shape: f32[1,128], index: 6, kind: input, shape index: {}]   ;;  %s8313_s7 = inlined_call_operand.vmem [shape: f32[16,128], index: 7, kind: output, shape index: {}]  }
   0x1   :  { %v29_v0 = vld [vmem:[%s8306_s1] sm:$0xff]  ;;  %166 = vmatprep.mubr.bf16.mxu0 %v6393_v2  ;;  %209 = vmatprep.mubr.bf16.mxu1 %v6393_v2  ;;  %v30_v6 = vld [vmem:[%s8306_s1 + $0x8] sm:$0xff]  ;;  %v31_v8 = vld [vmem:[%s8306_s1 + $0x10] sm:$0xff] }
   0x2   :  { %v37_v1 = vld [vmem:[%s8306_s1 + $0x40] sm:$0xff]  ;;  %v38_v7 = vld [vmem:[%s8306_s1 + $0x48] sm:$0xff]  ;;  %v39_v9 = vld [vmem:[%s8306_s1 + $0x50] sm:$0xff] }
   0x3   :  { %v4919_v3 = vcombine.high %v29_v0, %v37_v1  ;;  %v4918_v4 = vcombine.low %v29_v0, %v37_v1  ;;  %v6446_v5 = vld [vmem:[%s8307_s0] sm:$0xff]   ;;  %v4921_v10 = vcombine.high %v30_v6, %v38_v7  ;;  %v4920_v11 = vcombine.low %v30_v6, %v38_v7  ;;  %v32_v13 = vld [vmem:[%s8306_s1 + $0x18] sm:$0xff]  ;;  %v34_v19 = vld [vmem:[%s8306_s1 + $0x28] sm:$0xff] }
   0x4   :  { %v4923_v12 = vcombine.high %v31_v8, %v39_v9  ;;  %v40_v14 = vld [vmem:[%s8306_s1 + $0x58] sm:$0xff]  ;;  %v33_v15 = vld [vmem:[%s8306_s1 + $0x20] sm:$0xff]  ;;  %v4922_v16 = vcombine.low %v31_v8, %v39_v9  ;;  %v42_v20 = vld [vmem:[%s8306_s1 + $0x68] sm:$0xff] }
   0x5   :  { %134 = vmatprep.subr.bf16.mxu0 %v4919_v3  ;;  %v4925_v17 = vcombine.high %v32_v13, %v40_v14  ;;  %v41_v18 = vld [vmem:[%s8306_s1 + $0x60] sm:$0xff]  ;;  %177 = vmatprep.subr.bf16.mxu1 %v4921_v10  ;;  %v4924_v22 = vcombine.low %v32_v13, %v40_v14  ;;  %v4929_v23 = vcombine.high %v34_v19, %v42_v20  ;;  %v35_v24 = vld [vmem:[%s8306_s1 + $0x30] sm:$0xff]  ;;  %v36_v27 = vld [vmem:[%s8306_s1 + $0x38] sm:$0xff] }
   0x6   :  { %135 = vmatpush1.bf16.msra.mxu0 %v4918_v4  ;;  %v4927_v21 = vcombine.high %v33_v15, %v41_v18  ;;  %178 = vmatpush1.bf16.msra.mxu1 %v4920_v11  ;;  %v43_v25 = vld [vmem:[%s8306_s1 + $0x70] sm:$0xff]  ;;  %v4926_v26 = vcombine.low %v33_v15, %v41_v18  ;;  %v44_v28 = vld [vmem:[%s8306_s1 + $0x78] sm:$0xff]  ;;  %v4928_v30 = vcombine.low %v34_v19, %v42_v20 }
   0x7   :  { %220 = vmatprep.subr.bf16.mxu0 %v4923_v12  ;;  %263 = vmatprep.subr.bf16.mxu1 %v4925_v17  ;;  %v4931_v29 = vcombine.high %v35_v24, %v43_v25  ;;  %v4933_v31 = vcombine.high %v36_v27, %v44_v28  ;;  %v4930_v32 = vcombine.low %v35_v24, %v43_v25  ;;  %v5593_v33 = vld [vmem:[%s8308_s3 + $0x4] ss:$16 sps:$4 sm:$0xff]   ;;  %v5596_v35 = vld [vmem:[%s8308_s3 + $0xc] ss:$16 sps:$4 sm:$0xff]   ;;  %v5591_v36 = vld [vmem:[%s8308_s3] ss:$16 sps:$4 sm:$0xff]  }
   0x8   :  { %v4932_v34 = vcombine.low %v36_v27, %v44_v28  ;;  %v5599_v37 = vld [vmem:[%s8308_s3 + $0x24] ss:$16 sps:$4 sm:$0xff]   ;;  %v5594_v38 = vld [vmem:[%s8308_s3 + $0x8] ss:$16 sps:$4 sm:$0xff]   ;;  %v5602_v39 = vld [vmem:[%s8308_s3 + $0x2c] ss:$16 sps:$4 sm:$0xff]  }
   0x9   :  { %4934 = vmatmul.mubr.msk.bf16.vlgmr.msra.gmra.mrb[0].mxu0 %vm130_vm0, %v6446_v5  ;;  %4935 = vmatmul.mubr.msk.bf16.vlgmr.msra.gmra.mrb[0].mxu1 %vm130_vm0, %v6446_v5  ;;  %v5597_v40 = vld [vmem:[%s8308_s3 + $0x20] ss:$16 sps:$4 sm:$0xff]   ;;  %v5605_v41 = vld [vmem:[%s8308_s3 + $0x44] ss:$16 sps:$4 sm:$0xff]   ;;  %v5600_v42 = vld [vmem:[%s8308_s3 + $0x28] ss:$16 sps:$4 sm:$0xff]  }
   0xa   :  { %221 = vmatpush1.bf16.msra.mxu0 %v4922_v16  ;;  %252 = vmatprep.mubr.bf16.mxu0 %v6393_v2  ;;  %v5608_v43 = vld [vmem:[%s8308_s3 + $0x4c] ss:$16 sps:$4 sm:$0xff]   ;;  %v5603_v44 = vld [vmem:[%s8308_s3 + $0x40] ss:$16 sps:$4 sm:$0xff]   ;;  %v5611_v45 = vld [vmem:[%s8308_s3 + $0x64] ss:$16 sps:$4 sm:$0xff]  }
   0xb   :  { %306 = vmatprep.subr.bf16.mxu0 %v4927_v21  ;;  %264 = vmatpush1.bf16.msra.mxu1 %v4924_v22  ;;  %v5606_v46 = vld [vmem:[%s8308_s3 + $0x48] ss:$16 sps:$4 sm:$0xff]   ;;  %v5614_v47 = vld [vmem:[%s8308_s3 + $0x6c] ss:$16 sps:$4 sm:$0xff]   ;;  %v5609_v48 = vld [vmem:[%s8308_s3 + $0x60] ss:$16 sps:$4 sm:$0xff]  }
   0xc   :  { %295 = vmatprep.mubr.bf16.mxu1 %v6393_v2  ;;  %349 = vmatprep.subr.bf16.mxu1 %v4929_v23  ;;  %v5612_v49 = vld [vmem:[%s8308_s3 + $0x68] ss:$16 sps:$4 sm:$0xff]   ;;  %v5617_v50 = vld [vmem:[%s8308_s3 + $0x84] ss:$16 sps:$4 sm:$0xff]   ;;  %v5615_v51 = vld [vmem:[%s8308_s3 + $0x80] ss:$16 sps:$4 sm:$0xff]  }
   0xd   :  { %v5620_v52 = vld [vmem:[%s8308_s3 + $0x8c] ss:$16 sps:$4 sm:$0xff]   ;;  %v5623_v53 = vld [vmem:[%s8308_s3 + $0xa4] ss:$16 sps:$4 sm:$0xff]   ;;  %v5618_v54 = vld [vmem:[%s8308_s3 + $0x88] ss:$16 sps:$4 sm:$0xff]  }
   0xe   :  { %v5626_v55 = vld [vmem:[%s8308_s3 + $0xac] ss:$16 sps:$4 sm:$0xff]   ;;  %v5621_v56 = vld [vmem:[%s8308_s3 + $0xa0] ss:$16 sps:$4 sm:$0xff]   ;;  %v5629_v57 = vld [vmem:[%s8308_s3 + $0xc4] ss:$16 sps:$4 sm:$0xff]  }
   0xf   :  { %v5624_v58 = vld [vmem:[%s8308_s3 + $0xa8] ss:$16 sps:$4 sm:$0xff]   ;;  %v5632_v59 = vld [vmem:[%s8308_s3 + $0xcc] ss:$16 sps:$4 sm:$0xff]   ;;  %v5627_v60 = vld [vmem:[%s8308_s3 + $0xc0] ss:$16 sps:$4 sm:$0xff]  }
  0x10   :  { %v5635_v61 = vld [vmem:[%s8308_s3 + $0xe4] ss:$16 sps:$4 sm:$0xff]   ;;  %v5630_v62 = vld [vmem:[%s8308_s3 + $0xc8] ss:$16 sps:$4 sm:$0xff]   ;;  %v5638_v63 = vld [vmem:[%s8308_s3 + $0xec] ss:$16 sps:$4 sm:$0xff]  }
  0x11   :  { %4936 = vmatmul.mubr.msk.bf16.vlgmr.msra.gmra.mrb[4].mxu0 %vm130_vm0, %v6446_v5  ;;  %4937 = vmatmul.mubr.msk.bf16.vlgmr.msra.gmra.mrb[4].mxu1 %vm130_vm0, %v6446_v5  ;;  %v5633_v0 = vld [vmem:[%s8308_s3 + $0xe0] ss:$16 sps:$4 sm:$0xff]   ;;  %v5641_v1 = vld [vmem:[%s8308_s3 + $0x104] ss:$16 sps:$4 sm:$0xff]   ;;  %v5636_v3 = vld [vmem:[%s8308_s3 + $0xe8] ss:$16 sps:$4 sm:$0xff]  }
  0x12   :  { %307 = vmatpush1.bf16.msra.mxu0 %v4926_v26  ;;  %338 = vmatprep.mubr.bf16.mxu0 %v6393_v2  ;;  %v5644_v4 = vld [vmem:[%s8308_s3 + $0x10c] ss:$16 sps:$4 sm:$0xff]   ;;  %v5647_v6 = vld [vmem:[%s8308_s3 + $0x124] ss:$16 sps:$4 sm:$0xff]   ;;  %v5642_v7 = vld [vmem:[%s8308_s3 + $0x108] ss:$16 sps:$4 sm:$0xff]  }
  0x13   :  { %392 = vmatprep.subr.bf16.mxu0 %v4931_v29  ;;  %350 = vmatpush1.bf16.msra.mxu1 %v4928_v30  ;;  %v5650_v8 = vld [vmem:[%s8308_s3 + $0x12c] ss:$16 sps:$4 sm:$0xff]   ;;  %v5645_v9 = vld [vmem:[%s8308_s3 + $0x120] ss:$16 sps:$4 sm:$0xff]   ;;  %v5653_v10 = vld [vmem:[%s8308_s3 + $0x144] ss:$16 sps:$4 sm:$0xff]  }
  0x14   :  { %381 = vmatprep.mubr.bf16.mxu1 %v6393_v2  ;;  %435 = vmatprep.subr.bf16.mxu1 %v4933_v31  ;;  %v5648_v11 = vld [vmem:[%s8308_s3 + $0x128] ss:$16 sps:$4 sm:$0xff]   ;;  %v5656_v12 = vld [vmem:[%s8308_s3 + $0x14c] ss:$16 sps:$4 sm:$0xff]   ;;  %v5651_v13 = vld [vmem:[%s8308_s3 + $0x140] ss:$16 sps:$4 sm:$0xff]  }
  0x15   :  { %v5659_v14 = vld [vmem:[%s8308_s3 + $0x164] ss:$16 sps:$4 sm:$0xff]   ;;  %v5654_v15 = vld [vmem:[%s8308_s3 + $0x148] ss:$16 sps:$4 sm:$0xff]   ;;  %v5662_v16 = vld [vmem:[%s8308_s3 + $0x16c] ss:$16 sps:$4 sm:$0xff]  }
  0x16   :  { %v5657_v17 = vld [vmem:[%s8308_s3 + $0x160] ss:$16 sps:$4 sm:$0xff]   ;;  %v5665_v18 = vld [vmem:[%s8308_s3 + $0x184] ss:$16 sps:$4 sm:$0xff]   ;;  %v5660_v19 = vld [vmem:[%s8308_s3 + $0x168] ss:$16 sps:$4 sm:$0xff]  }
  0x17   :  { %v5668_v20 = vld [vmem:[%s8308_s3 + $0x18c] ss:$16 sps:$4 sm:$0xff]   ;;  %v5663_v21 = vld [vmem:[%s8308_s3 + $0x180] ss:$16 sps:$4 sm:$0xff]   ;;  %v5671_v22 = vld [vmem:[%s8308_s3 + $0x1a4] ss:$16 sps:$4 sm:$0xff]  }
  0x18   :  { %v5666_v23 = vld [vmem:[%s8308_s3 + $0x188] ss:$16 sps:$4 sm:$0xff]   ;;  %v5674_v24 = vld [vmem:[%s8308_s3 + $0x1ac] ss:$16 sps:$4 sm:$0xff]   ;;  %v5669_v25 = vld [vmem:[%s8308_s3 + $0x1a0] ss:$16 sps:$4 sm:$0xff]  }
  0x19   :  { %4938 = vmatmul.mubr.msk.bf16.vlgmr.msra.gmra.mrb[8].mxu0 %vm130_vm0, %v6446_v5  ;;  %4939 = vmatmul.mubr.msk.bf16.vlgmr.msra.gmra.mrb[8].mxu1 %vm130_vm0, %v6446_v5  ;;  %v5672_v26 = vld [vmem:[%s8308_s3 + $0x1a8] ss:$16 sps:$4 sm:$0xff]   ;;  %v5677_v27 = vld [vmem:[%s8308_s3 + $0x1c4] ss:$16 sps:$4 sm:$0xff]   ;;  %v5680_v28 = vld [vmem:[%s8308_s3 + $0x1cc] ss:$16 sps:$4 sm:$0xff]  }
  0x1a   :  { %393 = vmatpush1.bf16.msra.mxu0 %v4930_v32  ;;  %424 = vmatprep.mubr.bf16.mxu0 %v6393_v2  ;;  %v5675_v29 = vld [vmem:[%s8308_s3 + $0x1c0] ss:$16 sps:$4 sm:$0xff]   ;;  %v5678_v30 = vld [vmem:[%s8308_s3 + $0x1c8] ss:$16 sps:$4 sm:$0xff]   ;;  %v5683_v31 = vld [vmem:[%s8308_s3 + $0x1e4] ss:$16 sps:$4 sm:$0xff]  }
  0x1b   :  { %3812 = vmatprep.subr.bf16.mxu0 %v5593_v33  ;;  %436 = vmatpush1.bf16.msra.mxu1 %v4932_v34  ;;  %v5686_v32 = vld [vmem:[%s8308_s3 + $0x1ec] ss:$16 sps:$4 sm:$0xff]   ;;  %v5681_v33 = vld [vmem:[%s8308_s3 + $0x1e0] ss:$16 sps:$4 sm:$0xff]   ;;  %v5684_v34 = vld [vmem:[%s8308_s3 + $0x1e8] ss:$16 sps:$4 sm:$0xff]  }
  0x1c   :  { %467 = vmatprep.mubr.bf16.mxu1 %v6393_v2  ;;  %4156 = vmatprep.subr.bf16.mxu1 %v5596_v35  ;;  %v5689_v35 = vld [vmem:[%s8308_s3 + $0x204] ss:$16 sps:$4 sm:$0xff]  }
  0x21   :  { %4940 = vmatmul.mubr.msk.bf16.vlgmr.msra.gmra.mrb[12].mxu0 %vm130_vm0, %v6446_v5  ;;  %4941 = vmatmul.mubr.msk.bf16.vlgmr.msra.gmra.mrb[12].mxu1 %vm130_vm0, %v6446_v5  ;;  %v5639_v5 = vld [vmem:[%s8308_s3 + $0x100] ss:$16 sps:$4 sm:$0xff]  }
  0x22   :  { %3813 = vmatpush1.bf16.msra.mxu0 %v5591_v36  ;;  %4157 = vmatpush1.bf16.msra.mxu1 %v5594_v38  ;;  %v5692_v36 = vld [vmem:[%s8308_s3 + $0x20c] ss:$16 sps:$4 sm:$0xff]  }
  0x23   :  { %3814 = vmatprep.subr.bf16.mxu0 %v5599_v37  ;;  %4158 = vmatprep.subr.bf16.mxu1 %v5602_v39  ;;  %v6394_v37 = vmov 1966171168   ;;  %v502_v39 = vlaneseq }
  0x24   :  { %v500_v38 = vunpack.c.l.s4 %v6394_v37  ;;  %v495_v37 = vld [vmem:[%s8309_s2 + $0x8] sm:$0xff] }
  0x26   :  { %3815 = vmatpush1.bf16.msra.mxu0 %v5597_v40  ;;  %4159 = vmatpush1.bf16.msra.mxu1 %v5600_v42  ;;  %v501_v40 = vunpack.c.0.s8 %v500_v38  ;;  %v494_v42 = vld [vmem:[%s8309_s2] sm:$0xff] }
  0x27   :  { %3816 = vmatprep.subr.bf16.mxu0 %v5605_v41  ;;  %4160 = vmatprep.subr.bf16.mxu1 %v5608_v43  ;;  %v503_v41 = vshrl.u32 %v502_v39, 7  ;;  %v5699_v38 = vld [vmem:[%s8308_s3 + $0x240] ss:$16 sps:$4 sm:$0xff]   ;;  %v5702_v39 = vld [vmem:[%s8308_s3 + $0x248] ss:$16 sps:$4 sm:$0xff]  }
  0x29   :  { %v6713_v43 = vsub.s32 %v501_v40, %v503_v41 }
  0x2a   :  { %3817 = vmatpush1.bf16.msra.mxu0 %v5603_v44  ;;  %4161 = vmatpush1.bf16.msra.mxu1 %v5606_v46 }
  0x2b   :  { %3818 = vmatprep.subr.bf16.mxu0 %v5611_v45  ;;  %4162 = vmatprep.subr.bf16.mxu1 %v5614_v47  ;;  %v505_v44 = vrot.slane %v494_v42, %v6713_v43 }
  0x2d   :  { %v513_v45 = vcombine.high %v505_v44, %v505_v44  ;;  %v6717_v46 = vrot.slane %v505_v44, %v6713_v43  ;;  %v5710_v44 = vld [vmem:[%s8308_s3 + $0x26c] ss:$16 sps:$4 sm:$0xff]  }
  0x2e   :  { %3819 = vmatpush1.bf16.msra.mxu0 %v5609_v48  ;;  %4163 = vmatpush1.bf16.msra.mxu1 %v5612_v49  ;;  %v498_v48 = vcombine.high %v494_v42, %v494_v42  ;;  %v5707_v42 = vld [vmem:[%s8308_s3 + $0x264] ss:$16 sps:$4 sm:$0xff]  }
  0x2f   :  { %3820 = vmatprep.subr.bf16.mxu0 %v5617_v50  ;;  %4164 = vmatprep.subr.bf16.mxu1 %v5620_v52  ;;  %v535_v47 = vrot.slane %v513_v45, %v6713_v43  ;;  %v597_v50 = vpack.i.b16 %v6717_v46, %v6717_v46 }
  0x31   :  { %v545_v49 = vcombine.high %v535_v47, %v535_v47  ;;  %v604_v52 = vpack.i.b16 %v535_v47, %v535_v47 }
  0x32   :  { %3821 = vmatpush1.bf16.msra.mxu0 %v5615_v51  ;;  %4165 = vmatpush1.bf16.msra.mxu1 %v5618_v54  ;;  %v6722_v51 = vsub.s32 0, %v503_v41  ;;  %v554_v41 = vrot.slane %v495_v37, %v6713_v43 }
  0x33   :  { %3822 = vmatprep.subr.bf16.mxu0 %v5623_v53  ;;  %4166 = vmatprep.subr.bf16.mxu1 %v5626_v55  ;;  %v6725_v53 = vrot.slane %v498_v48, %v6713_v43  ;;  %v618_v55 = vpack.i.b16 %v545_v49, %v545_v49 }
  0x34   :  { %v562_v49 = vcombine.high %v554_v41, %v554_v41 }
  0x36   :  { %3823 = vmatpush1.bf16.msra.mxu0 %v5621_v56  ;;  %4167 = vmatpush1.bf16.msra.mxu1 %v5624_v58  ;;  %v528_v58 = vrot.slane %v6725_v53, %v6713_v43 }
  0x37   :  { %3824 = vmatprep.subr.bf16.mxu0 %v5629_v57  ;;  %4168 = vmatprep.subr.bf16.mxu1 %v5632_v59  ;;  %v602_v57 = vrot.slane %v597_v50, %v6722_v51 }
  0x3a   :  { %3825 = vmatpush1.bf16.msra.mxu0 %v5627_v60  ;;  %4169 = vmatpush1.bf16.msra.mxu1 %v5630_v62  ;;  %v609_v60 = vrot.slane %v604_v52, %v6722_v51  ;;  %v5705_v52 = vld [vmem:[%s8308_s3 + $0x260] ss:$16 sps:$4 sm:$0xff]  }
  0x3b   :  { %3826 = vmatprep.subr.bf16.mxu0 %v5635_v61  ;;  %4170 = vmatprep.subr.bf16.mxu1 %v5638_v63 }
  0x3e   :  { %3827 = vmatpush1.bf16.msra.mxu0 %v5633_v0  ;;  %4171 = vmatpush1.bf16.msra.mxu1 %v5636_v3 }
  0x3f   :  { %3828 = vmatprep.subr.bf16.mxu0 %v5641_v1  ;;  %4172 = vmatprep.subr.bf16.mxu1 %v5644_v4  ;;  %v623_v4 = vrot.slane %v618_v55, %v6722_v51 }
  0x42   :  { %3829 = vmatpush1.bf16.msra.mxu0 %v5639_v5  ;;  %4173 = vmatpush1.bf16.msra.mxu1 %v5642_v7 }
  0x43   :  { %3830 = vmatprep.subr.bf16.mxu0 %v5647_v6  ;;  %4174 = vmatprep.subr.bf16.mxu1 %v5650_v8  ;;  %v625_v8 = vpack.i.b16 %v528_v58, %v528_v58 }
  0x46   :  { %3831 = vmatpush1.bf16.msra.mxu0 %v5645_v9  ;;  %4175 = vmatpush1.bf16.msra.mxu1 %v5648_v11  ;;  %v5690_v11 = vld [vmem:[%s8308_s3 + $0x208] ss:$16 sps:$4 sm:$0xff]  }
  0x47   :  { %3832 = vmatprep.subr.bf16.mxu0 %v5653_v10  ;;  %4176 = vmatprep.subr.bf16.mxu1 %v5656_v12  ;;  %v5687_v10 = vld [vmem:[%s8308_s3 + $0x200] ss:$16 sps:$4 sm:$0xff]  }
  0x4a   :  { %3833 = vmatpush1.bf16.msra.mxu0 %v5651_v13  ;;  %4177 = vmatpush1.bf16.msra.mxu1 %v5654_v15 }
  0x4b   :  { %3834 = vmatprep.subr.bf16.mxu0 %v5659_v14  ;;  %4178 = vmatprep.subr.bf16.mxu1 %v5662_v16 }
  0x4e   :  { %3835 = vmatpush1.bf16.msra.mxu0 %v5657_v17  ;;  %4179 = vmatpush1.bf16.msra.mxu1 %v5660_v19  ;;  %v5695_v17 = vld [vmem:[%s8308_s3 + $0x224] ss:$16 sps:$4 sm:$0xff]  }
  0x4f   :  { %3836 = vmatprep.subr.bf16.mxu0 %v5665_v18  ;;  %4180 = vmatprep.subr.bf16.mxu1 %v5668_v20  ;;  %v5698_v18 = vld [vmem:[%s8308_s3 + $0x22c] ss:$16 sps:$4 sm:$0xff]   ;;  %v630_v20 = vrot.slane %v625_v8, %v6722_v51 }
  0x52   :  { %3837 = vmatpush1.bf16.msra.mxu0 %v5663_v21  ;;  %4181 = vmatpush1.bf16.msra.mxu1 %v5666_v23 }
  0x53   :  { %3838 = vmatprep.subr.bf16.mxu0 %v5671_v22  ;;  %4182 = vmatprep.subr.bf16.mxu1 %v5674_v24 }
  0x56   :  { %3839 = vmatpush1.bf16.msra.mxu0 %v5669_v25  ;;  %4183 = vmatpush1.bf16.msra.mxu1 %v5672_v26  ;;  %v5693_v25 = vld [vmem:[%s8308_s3 + $0x220] ss:$16 sps:$4 sm:$0xff]   ;;  %v5696_v26 = vld [vmem:[%s8308_s3 + $0x228] ss:$16 sps:$4 sm:$0xff]  }
  0x57   :  { %3840 = vmatprep.subr.bf16.mxu0 %v5677_v27  ;;  %4184 = vmatprep.subr.bf16.mxu1 %v5680_v28 }
  0x5a   :  { %3841 = vmatpush1.bf16.msra.mxu0 %v5675_v29  ;;  %4185 = vmatpush1.bf16.msra.mxu1 %v5678_v30  ;;  %v5701_v29 = vld [vmem:[%s8308_s3 + $0x244] ss:$16 sps:$4 sm:$0xff]   ;;  %v5704_v30 = vld [vmem:[%s8308_s3 + $0x24c] ss:$16 sps:$4 sm:$0xff]  }
  0x5b   :  { %3842 = vmatprep.subr.bf16.mxu0 %v5683_v31  ;;  %4186 = vmatprep.subr.bf16.mxu1 %v5686_v32 }
  0x5e   :  { %3843 = vmatpush1.bf16.msra.mxu0 %v5681_v33  ;;  %4187 = vmatpush1.bf16.msra.mxu1 %v5684_v34  ;;  %v544_v33 = vcombine.high %v528_v58, %v528_v58  ;;  %v6809_v58 = vrot.slane %v562_v49, %v6713_v43 }
  0x5f   :  { %3855 = vmatprep.subr.bf16.mxu0 %v5689_v35  ;;  %4199 = vmatprep.subr.bf16.mxu1 %v5692_v36 }
  0x60   :  { %v639_v36 = vpack.i.b16 %v544_v33, %v544_v33 }
  0x62   :  { %v644_v45 = vrot.slane %v639_v36, %v6722_v51  ;;  %v5725_v36 = vld [vmem:[%s8308_s3 + $0x2c4] ss:$16 sps:$4 sm:$0xff]  }
  0xdc   :  { %v168_v54 = vpop.f32.mrb[0].mxu0  ;;  %v6731_v61 = vpop.f32.mrb[0].mxu1 }
  0xdd   :  { %v170_v56 = vpop.f32.mrb[1].mxu0  ;;  %v213_v0 = vpop.f32.mrb[1].mxu1 }
  0xde   :  { %v172_v59 = vpop.f32.mrb[2].mxu0  ;;  %v6733_v3 = vpop.f32.mrb[2].mxu1 }
  0xdf   :  { %v478_v62 = vpack.c.bf16 %v172_v59, %v168_v54  ;;  %v174_v63 = vpop.f32.mrb[3].mxu0  ;;  %v480_v6 = vpack.c.bf16 %v6733_v3, %v6731_v61  ;;  %v217_v7 = vpop.f32.mrb[3].mxu1  ;;  %v5708_v54 = vld [vmem:[%s8308_s3 + $0x268] ss:$16 sps:$4 sm:$0xff]   ;;  %v5713_v59 = vld [vmem:[%s8308_s3 + $0x284] ss:$16 sps:$4 sm:$0xff]  }
  0xe0   :  { %v479_v1 = vpack.c.bf16 %v174_v63, %v170_v56  ;;  %v481_v12 = vpack.c.bf16 %v217_v7, %v213_v0  ;;  %v570_v56 = vrot.slane %v554_v41, %v6713_v43  ;;  %v5783_v61 = vld [vmem:[%s8308_s3 + $0x400] ss:$16 sps:$4 sm:$0xff]   ;;  %v5786_v3 = vld [vmem:[%s8308_s3 + $0x408] ss:$16 sps:$4 sm:$0xff]  }
  0xe1   :  { %v708_v5 = vadd.bf16 %v602_v57, %v478_v62 }
  0xe2   :  { %v709_v9 = vadd.bf16 %v609_v60, %v479_v1  ;;  %v711_v14 = vadd.bf16 %v623_v4, %v481_v12  ;;  %v5716_v60 = vld [vmem:[%s8308_s3 + $0x28c] ss:$16 sps:$4 sm:$0xff]   ;;  %v653_v1 = vpack.i.b16 %v570_v56, %v570_v56  ;;  %v592_v7 = vcombine.high %v570_v56, %v570_v56  ;;  %v5714_v12 = vld [vmem:[%s8308_s3 + $0x288] ss:$16 sps:$4 sm:$0xff]  }
  0xe3   :  { %v724_v16 = vmax.bf16 %v6393_v2, %v708_v5 }
  0xe4   :  { %v725_v13 = vmax.bf16 %v6393_v2, %v709_v9  ;;  %v254_v15 = vpop.f32.mrb[4].mxu0  ;;  %v727_v21 = vmax.bf16 %v6393_v2, %v711_v14  ;;  %v297_v28 = vpop.f32.mrb[4].mxu1  ;;  %v667_v14 = vpack.i.b16 %v592_v7, %v592_v7 }
  0xe5   :  { %v6752_v19 = vpop.f32.mrb[5].mxu0  ;;  %v6774_v32 = vpop.f32.mrb[5].mxu1 }
  0xe6   :  { %3844 = vmatprep.mubr.bf16.mxu0 %v725_v13  ;;  %4188 = vmatprep.mubr.bf16.mxu1 %v725_v13  ;;  %v258_v22 = vpop.f32.mrb[6].mxu0  ;;  %v301_v34 = vpop.f32.mrb[6].mxu1  ;;  %v658_v13 = vrot.slane %v653_v1, %v6722_v51  ;;  %v5734_v1 = vld [vmem:[%s8308_s3 + $0x2ec] ss:$16 sps:$4 sm:$0xff]  }
  0xe7   :  { %3845 = vmatmul.mubr.bf16.vlgmr.msra.gmra.mrb[16].mxu0 %v724_v16  ;;  %4189 = vmatmul.mubr.bf16.vlgmr.msra.gmra.mrb[16].mxu1 %v724_v16  ;;  %v482_v23 = vpack.c.bf16 %v258_v22, %v254_v15  ;;  %v6756_v24 = vpop.f32.mrb[7].mxu0  ;;  %v484_v35 = vpack.c.bf16 %v301_v34, %v297_v28  ;;  %v6785_v40 = vpop.f32.mrb[7].mxu1  ;;  %v5719_v16 = vld [vmem:[%s8308_s3 + $0x2a4] ss:$16 sps:$4 sm:$0xff]   ;;  %v547_v22 = vcombine.high %v495_v37, %v495_v37  ;;  %v5728_v37 = vld [vmem:[%s8308_s3 + $0x2cc] ss:$16 sps:$4 sm:$0xff]  }
  0xe8   :  { %3856 = vmatpush1.bf16.msra.mxu0 %v5687_v10  ;;  %4200 = vmatpush1.bf16.msra.mxu1 %v5690_v11  ;;  %v483_v27 = vpack.c.bf16 %v6756_v24, %v6752_v19  ;;  %v485_v47 = vpack.c.bf16 %v6785_v40, %v6774_v32  ;;  %v594_v10 = vcombine.high %v6809_v58, %v6809_v58  ;;  %v5711_v11 = vld [vmem:[%s8308_s3 + $0x280] ss:$16 sps:$4 sm:$0xff]   ;;  %v5794_v19 = vld [vmem:[%s8308_s3 + $0x42c] ss:$16 sps:$4 sm:$0xff]   ;;  %v5888_v32 = vld [vmem:[%s8308_s3 + $0x624] ss:$16 sps:$4 sm:$0xff]  }
  0xe9   :  { %3857 = vmatprep.subr.bf16.mxu0 %v5695_v17  ;;  %4201 = vmatprep.subr.bf16.mxu1 %v5698_v18  ;;  %v6772_v31 = vadd.bf16 %v630_v20, %v482_v23  ;;  %v6797_v50 = vadd.bf16 %v644_v45, %v484_v35  ;;  %v5722_v17 = vld [vmem:[%s8308_s3 + $0x2ac] ss:$16 sps:$4 sm:$0xff]   ;;  %v561_v28 = vrot.slane %v547_v22, %v6713_v43 }
  0xea   :  { %3887 = vmatprep.mubr.bf16.mxu0 %v727_v21  ;;  %4231 = vmatprep.mubr.bf16.mxu1 %v727_v21  ;;  %v674_v20 = vpack.i.b16 %v594_v10, %v594_v10  ;;  %v5891_v40 = vld [vmem:[%s8308_s3 + $0x62c] ss:$16 sps:$4 sm:$0xff]  }
  0xeb   :  { %v577_v41 = vrot.slane %v561_v28, %v6713_v43 }
  0xec   :  { %3858 = vmatpush1.bf16.msra.mxu0 %v5693_v25  ;;  %4202 = vmatpush1.bf16.msra.mxu1 %v5696_v26  ;;  %v340_v48 = vpop.f32.mrb[8].mxu0  ;;  %v383_v57 = vpop.f32.mrb[8].mxu1  ;;  %v672_v25 = vrot.slane %v667_v14, %v6722_v51  ;;  %v679_v26 = vrot.slane %v674_v20, %v6722_v51  ;;  %v5729_v14 = vld [vmem:[%s8308_s3 + $0x2e0] ss:$16 sps:$4 sm:$0xff]   ;;  %v5740_v20 = vld [vmem:[%s8308_s3 + $0x30c] ss:$16 sps:$4 sm:$0xff]  }
  0xed   :  { %3859 = vmatprep.subr.bf16.mxu0 %v5701_v29  ;;  %4203 = vmatprep.subr.bf16.mxu1 %v5704_v30  ;;  %v6805_v55 = vpop.f32.mrb[9].mxu0  ;;  %v385_v63 = vpop.f32.mrb[9].mxu1  ;;  %v5717_v29 = vld [vmem:[%s8308_s3 + $0x2a0] ss:$16 sps:$4 sm:$0xff]   ;;  %v5720_v30 = vld [vmem:[%s8308_s3 + $0x2a8] ss:$16 sps:$4 sm:$0xff]  }
  0xee   :  { %v344_v62 = vpop.f32.mrb[10].mxu0  ;;  %v387_v5 = vpop.f32.mrb[10].mxu1 }
  0xef   :  { %v486_v0 = vpack.c.bf16 %v344_v62, %v340_v48  ;;  %v6817_v4 = vpop.f32.mrb[11].mxu0  ;;  %v488_v9 = vpack.c.bf16 %v387_v5, %v383_v57  ;;  %v389_v15 = vpop.f32.mrb[11].mxu1  ;;  %v593_v62 = vcombine.high %v577_v41, %v577_v41 }
  0xf0   :  { %3860 = vmatpush1.bf16.msra.mxu0 %v5699_v38  ;;  %4204 = vmatpush1.bf16.msra.mxu1 %v5702_v39  ;;  %v487_v8 = vpack.c.bf16 %v6817_v4, %v6805_v55  ;;  %v489_v18 = vpack.c.bf16 %v389_v15, %v385_v63  ;;  %v5732_v15 = vld [vmem:[%s8308_s3 + $0x2e8] ss:$16 sps:$4 sm:$0xff]   ;;  %v5985_v55 = vld [vmem:[%s8308_s3 + $0x824] ss:$16 sps:$4 sm:$0xff]   ;;  %v5988_v4 = vld [vmem:[%s8308_s3 + $0x82c] ss:$16 sps:$4 sm:$0xff]  }
  0xf1   :  { %3861 = vmatprep.subr.bf16.mxu0 %v5707_v42  ;;  %4205 = vmatprep.subr.bf16.mxu1 %v5710_v44  ;;  %v6836_v23 = vadd.bf16 %v658_v13, %v486_v0  ;;  %v6847_v33 = vadd.bf16 %v672_v25, %v488_v9  ;;  %v563_v42 = vcombine.high %v561_v28, %v561_v28  ;;  %v5731_v0 = vld [vmem:[%s8308_s3 + $0x2e4] ss:$16 sps:$4 sm:$0xff]   ;;  %v5738_v28 = vld [vmem:[%s8308_s3 + $0x308] ss:$16 sps:$4 sm:$0xff]  }
  0xf2   :  { %v6855_v38 = vadd.bf16 %v679_v26, %v489_v18  ;;  %v695_v10 = vpack.i.b16 %v593_v62, %v593_v62  ;;  %v5737_v18 = vld [vmem:[%s8308_s3 + $0x304] ss:$16 sps:$4 sm:$0xff]   ;;  %v5735_v26 = vld [vmem:[%s8308_s3 + $0x300] ss:$16 sps:$4 sm:$0xff]   ;;  %v543_v62 = vcombine.high %v6717_v46, %v6717_v46 }
  0xf3   :  { %v591_v56 = vrot.slane %v563_v42, %v6713_v43  ;;  %v5750_v42 = vld [vmem:[%s8308_s3 + $0x348] ss:$16 sps:$4 sm:$0xff]   ;;  %v5773_v46 = vld [vmem:[%s8308_s3 + $0x3c4] ss:$16 sps:$4 sm:$0xff]  }
  0xf4   :  { %3862 = vmatpush1.bf16.msra.mxu0 %v5705_v52  ;;  %4206 = vmatpush1.bf16.msra.mxu1 %v5708_v54  ;;  %v426_v21 = vpop.f32.mrb[12].mxu0  ;;  %v469_v35 = vpop.f32.mrb[12].mxu1  ;;  %v681_v52 = vpack.i.b16 %v577_v41, %v577_v41  ;;  %v5747_v41 = vld [vmem:[%s8308_s3 + $0x340] ss:$16 sps:$4 sm:$0xff]  }
  0xf5   :  { %3863 = vmatprep.subr.bf16.mxu0 %v5713_v59  ;;  %4207 = vmatprep.subr.bf16.mxu1 %v5716_v60  ;;  %v428_v34 = vpop.f32.mrb[13].mxu0  ;;  %v471_v44 = vpop.f32.mrb[13].mxu1  ;;  %v5723_v59 = vld [vmem:[%s8308_s3 + $0x2c0] ss:$16 sps:$4 sm:$0xff]   ;;  %v5726_v60 = vld [vmem:[%s8308_s3 + $0x2c8] ss:$16 sps:$4 sm:$0xff]   ;;  %v688_v7 = vpack.i.b16 %v591_v56, %v591_v56 }
  0xf6   :  { %v430_v39 = vpop.f32.mrb[14].mxu0  ;;  %v473_v49 = vpop.f32.mrb[14].mxu1  ;;  %v686_v5 = vrot.slane %v681_v52, %v6722_v51  ;;  %v5761_v52 = vld [vmem:[%s8308_s3 + $0x384] ss:$16 sps:$4 sm:$0xff]  }
  0xf7   :  { %v490_v45 = vpack.c.bf16 %v430_v39, %v426_v21  ;;  %v432_v48 = vpop.f32.mrb[15].mxu0  ;;  %v492_v57 = vpack.c.bf16 %v473_v49, %v469_v35  ;;  %v475_v63 = vpop.f32.mrb[15].mxu1  ;;  %v693_v13 = vrot.slane %v688_v7, %v6722_v51  ;;  %v5741_v35 = vld [vmem:[%s8308_s3 + $0x320] ss:$16 sps:$4 sm:$0xff]   ;;  %v5752_v39 = vld [vmem:[%s8308_s3 + $0x34c] ss:$16 sps:$4 sm:$0xff]  }
  0xf8   :  { %3864 = vmatpush1.bf16.msra.mxu0 %v5711_v11  ;;  %4208 = vmatpush1.bf16.msra.mxu1 %v5714_v12  ;;  %v491_v54 = vpack.c.bf16 %v432_v48, %v428_v34  ;;  %v493_v9 = vpack.c.bf16 %v475_v63, %v471_v44  ;;  %v595_v11 = vcombine.high %v591_v56, %v591_v56  ;;  %v5746_v34 = vld [vmem:[%s8308_s3 + $0x32c] ss:$16 sps:$4 sm:$0xff]   ;;  %v5755_v44 = vld [vmem:[%s8308_s3 + $0x364] ss:$16 sps:$4 sm:$0xff]   ;;  %v5753_v48 = vld [vmem:[%s8308_s3 + $0x360] ss:$16 sps:$4 sm:$0xff]  }
  0xf9   :  { %3865 = vmatprep.subr.bf16.mxu0 %v5719_v16  ;;  %4209 = vmatprep.subr.bf16.mxu1 %v5722_v17  ;;  %v6872_v12 = vadd.bf16 %v686_v5, %v490_v45  ;;  %v700_v16 = vrot.slane %v695_v10, %v6722_v51  ;;  %v5758_v45 = vld [vmem:[%s8308_s3 + $0x36c] ss:$16 sps:$4 sm:$0xff]   ;;  %v5756_v49 = vld [vmem:[%s8308_s3 + $0x368] ss:$16 sps:$4 sm:$0xff]   ;;  %v514_v56 = vcombine.high %v6725_v53, %v6725_v53  ;;  %v5771_v10 = vld [vmem:[%s8308_s3 + $0x3c0] ss:$16 sps:$4 sm:$0xff]  }
  0xfa   :  { %v702_v17 = vpack.i.b16 %v595_v11, %v595_v11  ;;  %v6888_v21 = vadd.bf16 %v693_v13, %v491_v54  ;;  %v5764_v54 = vld [vmem:[%s8308_s3 + $0x38c] ss:$16 sps:$4 sm:$0xff]   ;;  %v611_v5 = vpack.i.b16 %v543_v62, %v543_v62  ;;  %v5774_v11 = vld [vmem:[%s8308_s3 + $0x3c8] ss:$16 sps:$4 sm:$0xff]  }
  0xfb   :  { %v6890_v22 = vadd.bf16 %v700_v16, %v492_v57  ;;  %v5759_v57 = vld [vmem:[%s8308_s3 + $0x380] ss:$16 sps:$4 sm:$0xff]   ;;  %v5770_v53 = vld [vmem:[%s8308_s3 + $0x3ac] ss:$16 sps:$4 sm:$0xff]   ;;  %v6960_v63 = vrot.slane %v514_v56, %v6713_v43  ;;  %v5815_v56 = vld [vmem:[%s8308_s3 + $0x4a4] ss:$16 sps:$4 sm:$0xff]  }
  0xfc   :  { %3866 = vmatpush1.bf16.msra.mxu0 %v5717_v29  ;;  %4210 = vmatpush1.bf16.msra.mxu1 %v5720_v30  ;;  %v707_v25 = vrot.slane %v702_v17, %v6722_v51  ;;  %v5743_v30 = vld [vmem:[%s8308_s3 + $0x324] ss:$16 sps:$4 sm:$0xff]   ;;  %v5776_v7 = vld [vmem:[%s8308_s3 + $0x3cc] ss:$16 sps:$4 sm:$0xff]   ;;  %v616_v13 = vrot.slane %v611_v5, %v6722_v51  ;;  %v5777_v17 = vld [vmem:[%s8308_s3 + $0x3e0] ss:$16 sps:$4 sm:$0xff]  }
  0xfd   :  { %3867 = vmatprep.subr.bf16.mxu0 %v5725_v36  ;;  %4211 = vmatprep.subr.bf16.mxu1 %v5728_v37  ;;  %v5744_v36 = vld [vmem:[%s8308_s3 + $0x328] ss:$16 sps:$4 sm:$0xff]   ;;  %v5749_v37 = vld [vmem:[%s8308_s3 + $0x344] ss:$16 sps:$4 sm:$0xff]   ;;  %v5824_v62 = vld [vmem:[%s8308_s3 + $0x4cc] ss:$16 sps:$4 sm:$0xff]  }
  0xfe   :  { %v6899_v29 = vadd.bf16 %v707_v25, %v493_v9  ;;  %v632_v9 = vpack.i.b16 %v6960_v63, %v6960_v63  ;;  %v5785_v25 = vld [vmem:[%s8308_s3 + $0x404] ss:$16 sps:$4 sm:$0xff]  }
  0xff   :  { %v5827_v5 = vld [vmem:[%s8308_s3 + $0x4e4] ss:$16 sps:$4 sm:$0xff]  }
 0x100   :  { %3868 = vmatpush1.bf16.msra.mxu0 %v5723_v59  ;;  %4212 = vmatpush1.bf16.msra.mxu1 %v5726_v60  ;;  %v5762_v59 = vld [vmem:[%s8308_s3 + $0x388] ss:$16 sps:$4 sm:$0xff]   ;;  %v5767_v60 = vld [vmem:[%s8308_s3 + $0x3a4] ss:$16 sps:$4 sm:$0xff]   ;;  %v637_v16 = vrot.slane %v632_v9, %v6722_v51 }
 0x101   :  { %3869 = vmatprep.subr.bf16.mxu0 %v5731_v0  ;;  %4213 = vmatprep.subr.bf16.mxu1 %v5734_v1  ;;  %v5765_v0 = vld [vmem:[%s8308_s3 + $0x3a0] ss:$16 sps:$4 sm:$0xff]   ;;  %v5768_v1 = vld [vmem:[%s8308_s3 + $0x3a8] ss:$16 sps:$4 sm:$0xff]  }
 0x102   :  { %v5828_v9 = vld [vmem:[%s8308_s3 + $0x4e8] ss:$16 sps:$4 sm:$0xff]  }
 0x104   :  { %3870 = vmatpush1.bf16.msra.mxu0 %v5729_v14  ;;  %4214 = vmatpush1.bf16.msra.mxu1 %v5732_v15  ;;  %v5779_v14 = vld [vmem:[%s8308_s3 + $0x3e4] ss:$16 sps:$4 sm:$0xff]   ;;  %v5782_v15 = vld [vmem:[%s8308_s3 + $0x3ec] ss:$16 sps:$4 sm:$0xff]  }
 0x105   :  { %3871 = vmatprep.subr.bf16.mxu0 %v5737_v18  ;;  %4215 = vmatprep.subr.bf16.mxu1 %v5740_v20  ;;  %v5780_v18 = vld [vmem:[%s8308_s3 + $0x3e8] ss:$16 sps:$4 sm:$0xff]   ;;  %v710_v20 = vadd.bf16 %v616_v13, %v480_v6  ;;  %v5831_v13 = vld [vmem:[%s8308_s3 + $0x500] ss:$16 sps:$4 sm:$0xff]  }
 0x107   :  { %v726_v6 = vmax.bf16 %v6393_v2, %v710_v20  ;;  %v5845_v20 = vld [vmem:[%s8308_s3 + $0x544] ss:$16 sps:$4 sm:$0xff]  }
 0x108   :  { %3872 = vmatpush1.bf16.msra.mxu0 %v5735_v26  ;;  %4216 = vmatpush1.bf16.msra.mxu1 %v5738_v28  ;;  %v5788_v26 = vld [vmem:[%s8308_s3 + $0x40c] ss:$16 sps:$4 sm:$0xff]   ;;  %v713_v28 = vadd.bf16 %v637_v16, %v483_v27  ;;  %v5789_v27 = vld [vmem:[%s8308_s3 + $0x420] ss:$16 sps:$4 sm:$0xff]  }
 0x109   :  { %3873 = vmatprep.subr.bf16.mxu0 %v5743_v30  ;;  %4217 = vmatprep.subr.bf16.mxu1 %v5746_v34  ;;  %v5791_v30 = vld [vmem:[%s8308_s3 + $0x424] ss:$16 sps:$4 sm:$0xff]   ;;  %v5792_v34 = vld [vmem:[%s8308_s3 + $0x428] ss:$16 sps:$4 sm:$0xff]   ;;  %v5842_v16 = vld [vmem:[%s8308_s3 + $0x52c] ss:$16 sps:$4 sm:$0xff]  }
 0x10a   :  { %v729_v24 = vmax.bf16 %v6393_v2, %v713_v28  ;;  %v5846_v28 = vld [vmem:[%s8308_s3 + $0x548] ss:$16 sps:$4 sm:$0xff]  }
 0x10c   :  { %3874 = vmatpush1.bf16.msra.mxu0 %v5741_v35  ;;  %4218 = vmatpush1.bf16.msra.mxu1 %v5744_v36  ;;  %v5797_v35 = vld [vmem:[%s8308_s3 + $0x444] ss:$16 sps:$4 sm:$0xff]   ;;  %v5800_v36 = vld [vmem:[%s8308_s3 + $0x44c] ss:$16 sps:$4 sm:$0xff]  }
 0x10d   :  { %3875 = vmatprep.subr.bf16.mxu0 %v5749_v37  ;;  %4219 = vmatprep.subr.bf16.mxu1 %v5752_v39  ;;  %v5795_v37 = vld [vmem:[%s8308_s3 + $0x440] ss:$16 sps:$4 sm:$0xff]   ;;  %v5798_v39 = vld [vmem:[%s8308_s3 + $0x448] ss:$16 sps:$4 sm:$0xff]  }
 0x110   :  { %3876 = vmatpush1.bf16.msra.mxu0 %v5747_v41  ;;  %4220 = vmatpush1.bf16.msra.mxu1 %v5750_v42  ;;  %v5803_v41 = vld [vmem:[%s8308_s3 + $0x464] ss:$16 sps:$4 sm:$0xff]   ;;  %v5806_v42 = vld [vmem:[%s8308_s3 + $0x46c] ss:$16 sps:$4 sm:$0xff]  }
 0x111   :  { %3877 = vmatprep.subr.bf16.mxu0 %v5755_v44  ;;  %4221 = vmatprep.subr.bf16.mxu1 %v5758_v45  ;;  %v5801_v44 = vld [vmem:[%s8308_s3 + $0x460] ss:$16 sps:$4 sm:$0xff]   ;;  %v5804_v45 = vld [vmem:[%s8308_s3 + $0x468] ss:$16 sps:$4 sm:$0xff]  }
 0x114   :  { %3878 = vmatpush1.bf16.msra.mxu0 %v5753_v48  ;;  %4222 = vmatpush1.bf16.msra.mxu1 %v5756_v49  ;;  %v5809_v48 = vld [vmem:[%s8308_s3 + $0x484] ss:$16 sps:$4 sm:$0xff]   ;;  %v5812_v49 = vld [vmem:[%s8308_s3 + $0x48c] ss:$16 sps:$4 sm:$0xff]  }
 0x115   :  { %3879 = vmatprep.subr.bf16.mxu0 %v5761_v52  ;;  %4223 = vmatprep.subr.bf16.mxu1 %v5764_v54  ;;  %v5807_v52 = vld [vmem:[%s8308_s3 + $0x480] ss:$16 sps:$4 sm:$0xff]   ;;  %v5810_v54 = vld [vmem:[%s8308_s3 + $0x488] ss:$16 sps:$4 sm:$0xff]  }
 0x118   :  { %3880 = vmatpush1.bf16.msra.mxu0 %v5759_v57  ;;  %4224 = vmatpush1.bf16.msra.mxu1 %v5762_v59  ;;  %v5818_v57 = vld [vmem:[%s8308_s3 + $0x4ac] ss:$16 sps:$4 sm:$0xff]   ;;  %v5813_v59 = vld [vmem:[%s8308_s3 + $0x4a0] ss:$16 sps:$4 sm:$0xff]  }
 0x119   :  { %3881 = vmatprep.subr.bf16.mxu0 %v5767_v60  ;;  %4225 = vmatprep.subr.bf16.mxu1 %v5770_v53  ;;  %v5816_v60 = vld [vmem:[%s8308_s3 + $0x4a8] ss:$16 sps:$4 sm:$0xff]   ;;  %v5821_v53 = vld [vmem:[%s8308_s3 + $0x4c4] ss:$16 sps:$4 sm:$0xff]  }
 0x11c   :  { %3882 = vmatpush1.bf16.msra.mxu0 %v5765_v0  ;;  %4226 = vmatpush1.bf16.msra.mxu1 %v5768_v1  ;;  %v5819_v0 = vld [vmem:[%s8308_s3 + $0x4c0] ss:$16 sps:$4 sm:$0xff]   ;;  %v5822_v1 = vld [vmem:[%s8308_s3 + $0x4c8] ss:$16 sps:$4 sm:$0xff]  }
 0x11d   :  { %3883 = vmatprep.subr.bf16.mxu0 %v5773_v46  ;;  %4227 = vmatprep.subr.bf16.mxu1 %v5776_v7  ;;  %v5830_v46 = vld [vmem:[%s8308_s3 + $0x4ec] ss:$16 sps:$4 sm:$0xff]   ;;  %v5825_v7 = vld [vmem:[%s8308_s3 + $0x4e0] ss:$16 sps:$4 sm:$0xff]  }
 0x120   :  { %3884 = vmatpush1.bf16.msra.mxu0 %v5771_v10  ;;  %4228 = vmatpush1.bf16.msra.mxu1 %v5774_v11  ;;  %v5833_v10 = vld [vmem:[%s8308_s3 + $0x504] ss:$16 sps:$4 sm:$0xff]   ;;  %v5836_v11 = vld [vmem:[%s8308_s3 + $0x50c] ss:$16 sps:$4 sm:$0xff]  }
 0x121   :  { %3885 = vmatprep.subr.bf16.mxu0 %v5779_v14  ;;  %4229 = vmatprep.subr.bf16.mxu1 %v5782_v15  ;;  %v5834_v14 = vld [vmem:[%s8308_s3 + $0x508] ss:$16 sps:$4 sm:$0xff]   ;;  %v5839_v15 = vld [vmem:[%s8308_s3 + $0x524] ss:$16 sps:$4 sm:$0xff]  }
 0x124   :  { %3886 = vmatpush1.bf16.msra.mxu0 %v5777_v17  ;;  %4230 = vmatpush1.bf16.msra.mxu1 %v5780_v18  ;;  %v5837_v17 = vld [vmem:[%s8308_s3 + $0x520] ss:$16 sps:$4 sm:$0xff]   ;;  %v5840_v18 = vld [vmem:[%s8308_s3 + $0x528] ss:$16 sps:$4 sm:$0xff]  }
 0x125   :  { %3898 = vmatprep.subr.bf16.mxu0 %v5785_v25  ;;  %4242 = vmatprep.subr.bf16.mxu1 %v5788_v26  ;;  %v5848_v25 = vld [vmem:[%s8308_s3 + $0x54c] ss:$16 sps:$4 sm:$0xff]   ;;  %v5843_v26 = vld [vmem:[%s8308_s3 + $0x540] ss:$16 sps:$4 sm:$0xff]  }
 0x127   :  { %3888 = vmatmul.mubr.bf16.vlgmr.msra.gmra.mrb[16].mxu0 %v726_v6  ;;  %4232 = vmatmul.mubr.bf16.vlgmr.msra.gmra.mrb[16].mxu1 %v726_v6  ;;  %v5849_v6 = vld [vmem:[%s8308_s3 + $0x560] ss:$16 sps:$4 sm:$0xff]  }
 0x128   :  { %3899 = vmatpush1.bf16.msra.mxu0 %v5783_v61  ;;  %4243 = vmatpush1.bf16.msra.mxu1 %v5786_v3  ;;  %v5851_v61 = vld [vmem:[%s8308_s3 + $0x564] ss:$16 sps:$4 sm:$0xff]   ;;  %v5854_v3 = vld [vmem:[%s8308_s3 + $0x56c] ss:$16 sps:$4 sm:$0xff]  }
 0x129   :  { %3900 = vmatprep.subr.bf16.mxu0 %v5791_v30  ;;  %4244 = vmatprep.subr.bf16.mxu1 %v5794_v19  ;;  %v5852_v30 = vld [vmem:[%s8308_s3 + $0x568] ss:$16 sps:$4 sm:$0xff]   ;;  %v5857_v19 = vld [vmem:[%s8308_s3 + $0x584] ss:$16 sps:$4 sm:$0xff]  }
 0x12a   :  { %3930 = vmatprep.mubr.bf16.mxu0 %v729_v24  ;;  %4274 = vmatprep.mubr.bf16.mxu1 %v729_v24  ;;  %v5860_v24 = vld [vmem:[%s8308_s3 + $0x58c] ss:$16 sps:$4 sm:$0xff]  }
 0x12c   :  { %3901 = vmatpush1.bf16.msra.mxu0 %v5789_v27  ;;  %4245 = vmatpush1.bf16.msra.mxu1 %v5792_v34  ;;  %v5855_v27 = vld [vmem:[%s8308_s3 + $0x580] ss:$16 sps:$4 sm:$0xff]   ;;  %v5858_v34 = vld [vmem:[%s8308_s3 + $0x588] ss:$16 sps:$4 sm:$0xff]  }
 0x12d   :  { %3902 = vmatprep.subr.bf16.mxu0 %v5797_v35  ;;  %4246 = vmatprep.subr.bf16.mxu1 %v5800_v36  ;;  %v5863_v35 = vld [vmem:[%s8308_s3 + $0x5a4] ss:$16 sps:$4 sm:$0xff]   ;;  %v5866_v36 = vld [vmem:[%s8308_s3 + $0x5ac] ss:$16 sps:$4 sm:$0xff]  }
 0x130   :  { %3903 = vmatpush1.bf16.msra.mxu0 %v5795_v37  ;;  %4247 = vmatpush1.bf16.msra.mxu1 %v5798_v39  ;;  %v546_v37 = vcombine.high %v6960_v63, %v6960_v63  ;;  %v5861_v39 = vld [vmem:[%s8308_s3 + $0x5a0] ss:$16 sps:$4 sm:$0xff]   ;;  %v5873_v63 = vld [vmem:[%s8308_s3 + $0x5cc] ss:$16 sps:$4 sm:$0xff]  }
 0x131   :  { %3904 = vmatprep.subr.bf16.mxu0 %v5803_v41  ;;  %4248 = vmatprep.subr.bf16.mxu1 %v5806_v42  ;;  %v5864_v41 = vld [vmem:[%s8308_s3 + $0x5a8] ss:$16 sps:$4 sm:$0xff]   ;;  %v5870_v42 = vld [vmem:[%s8308_s3 + $0x5c4] ss:$16 sps:$4 sm:$0xff]  }
 0x134   :  { %3905 = vmatpush1.bf16.msra.mxu0 %v5801_v44  ;;  %4249 = vmatpush1.bf16.msra.mxu1 %v5804_v45  ;;  %v646_v44 = vpack.i.b16 %v546_v37, %v546_v37  ;;  %v5868_v45 = vld [vmem:[%s8308_s3 + $0x5c0] ss:$16 sps:$4 sm:$0xff]   ;;  %v5934_v37 = vld [vmem:[%s8308_s3 + $0x70c] ss:$16 sps:$4 sm:$0xff]  }
 0x135   :  { %3906 = vmatprep.subr.bf16.mxu0 %v5809_v48  ;;  %4250 = vmatprep.subr.bf16.mxu1 %v5812_v49  ;;  %v5871_v48 = vld [vmem:[%s8308_s3 + $0x5c8] ss:$16 sps:$4 sm:$0xff]   ;;  %v5876_v49 = vld [vmem:[%s8308_s3 + $0x5e4] ss:$16 sps:$4 sm:$0xff]  }
 0x138   :  { %3907 = vmatpush1.bf16.msra.mxu0 %v5807_v52  ;;  %4251 = vmatpush1.bf16.msra.mxu1 %v5810_v54  ;;  %v5879_v52 = vld [vmem:[%s8308_s3 + $0x5ec] ss:$16 sps:$4 sm:$0xff]   ;;  %v651_v54 = vrot.slane %v646_v44, %v6722_v51  ;;  %v5935_v44 = vld [vmem:[%s8308_s3 + $0x720] ss:$16 sps:$4 sm:$0xff]  }
 0x139   :  { %3908 = vmatprep.subr.bf16.mxu0 %v5815_v56  ;;  %4252 = vmatprep.subr.bf16.mxu1 %v5818_v57  ;;  %v5874_v56 = vld [vmem:[%s8308_s3 + $0x5e0] ss:$16 sps:$4 sm:$0xff]   ;;  %v5877_v57 = vld [vmem:[%s8308_s3 + $0x5e8] ss:$16 sps:$4 sm:$0xff]  }
 0x13c   :  { %3909 = vmatpush1.bf16.msra.mxu0 %v5813_v59  ;;  %4253 = vmatpush1.bf16.msra.mxu1 %v5816_v60  ;;  %v5882_v59 = vld [vmem:[%s8308_s3 + $0x604] ss:$16 sps:$4 sm:$0xff]   ;;  %v5885_v60 = vld [vmem:[%s8308_s3 + $0x60c] ss:$16 sps:$4 sm:$0xff]  }
 0x13d   :  { %3910 = vmatprep.subr.bf16.mxu0 %v5821_v53  ;;  %4254 = vmatprep.subr.bf16.mxu1 %v5824_v62  ;;  %v715_v53 = vadd.bf16 %v651_v54, %v485_v47  ;;  %v5880_v62 = vld [vmem:[%s8308_s3 + $0x600] ss:$16 sps:$4 sm:$0xff]   ;;  %v5944_v54 = vld [vmem:[%s8308_s3 + $0x748] ss:$16 sps:$4 sm:$0xff]  }
 0x13f   :  { %v731_v47 = vmax.bf16 %v6393_v2, %v715_v53  ;;  %v5955_v53 = vld [vmem:[%s8308_s3 + $0x784] ss:$16 sps:$4 sm:$0xff]  }
 0x140   :  { %3911 = vmatpush1.bf16.msra.mxu0 %v5819_v0  ;;  %4255 = vmatpush1.bf16.msra.mxu1 %v5822_v1  ;;  %v5883_v0 = vld [vmem:[%s8308_s3 + $0x608] ss:$16 sps:$4 sm:$0xff]   ;;  %v728_v1 = vmax.bf16 %v6393_v2, %v6772_v31  ;;  %v5886_v31 = vld [vmem:[%s8308_s3 + $0x620] ss:$16 sps:$4 sm:$0xff]  }
 0x141   :  { %3912 = vmatprep.subr.bf16.mxu0 %v5827_v5  ;;  %4256 = vmatprep.subr.bf16.mxu1 %v5830_v46  ;;  %v5889_v5 = vld [vmem:[%s8308_s3 + $0x628] ss:$16 sps:$4 sm:$0xff]   ;;  %v5894_v46 = vld [vmem:[%s8308_s3 + $0x644] ss:$16 sps:$4 sm:$0xff]  }
 0x144   :  { %3913 = vmatpush1.bf16.msra.mxu0 %v5825_v7  ;;  %4257 = vmatpush1.bf16.msra.mxu1 %v5828_v9  ;;  %v5897_v7 = vld [vmem:[%s8308_s3 + $0x64c] ss:$16 sps:$4 sm:$0xff]   ;;  %v5892_v9 = vld [vmem:[%s8308_s3 + $0x640] ss:$16 sps:$4 sm:$0xff]  }
 0x145   :  { %3914 = vmatprep.subr.bf16.mxu0 %v5833_v10  ;;  %4258 = vmatprep.subr.bf16.mxu1 %v5836_v11  ;;  %v5895_v10 = vld [vmem:[%s8308_s3 + $0x648] ss:$16 sps:$4 sm:$0xff]   ;;  %v5900_v11 = vld [vmem:[%s8308_s3 + $0x664] ss:$16 sps:$4 sm:$0xff]  }
 0x148   :  { %3915 = vmatpush1.bf16.msra.mxu0 %v5831_v13  ;;  %4259 = vmatpush1.bf16.msra.mxu1 %v5834_v14  ;;  %v5903_v13 = vld [vmem:[%s8308_s3 + $0x66c] ss:$16 sps:$4 sm:$0xff]   ;;  %v5898_v14 = vld [vmem:[%s8308_s3 + $0x660] ss:$16 sps:$4 sm:$0xff]  }
 0x149   :  { %3916 = vmatprep.subr.bf16.mxu0 %v5839_v15  ;;  %4260 = vmatprep.subr.bf16.mxu1 %v5842_v16  ;;  %v5901_v15 = vld [vmem:[%s8308_s3 + $0x668] ss:$16 sps:$4 sm:$0xff]   ;;  %v5906_v16 = vld [vmem:[%s8308_s3 + $0x684] ss:$16 sps:$4 sm:$0xff]  }
 0x14c   :  { %3917 = vmatpush1.bf16.msra.mxu0 %v5837_v17  ;;  %4261 = vmatpush1.bf16.msra.mxu1 %v5840_v18  ;;  %v5909_v17 = vld [vmem:[%s8308_s3 + $0x68c] ss:$16 sps:$4 sm:$0xff]   ;;  %v5904_v18 = vld [vmem:[%s8308_s3 + $0x680] ss:$16 sps:$4 sm:$0xff]  }
 0x14d   :  { %3918 = vmatprep.subr.bf16.mxu0 %v5845_v20  ;;  %4262 = vmatprep.subr.bf16.mxu1 %v5848_v25  ;;  %v5907_v20 = vld [vmem:[%s8308_s3 + $0x688] ss:$16 sps:$4 sm:$0xff]   ;;  %v5913_v25 = vld [vmem:[%s8308_s3 + $0x6a4] ss:$16 sps:$4 sm:$0xff]  }
 0x150   :  { %3919 = vmatpush1.bf16.msra.mxu0 %v5843_v26  ;;  %4263 = vmatpush1.bf16.msra.mxu1 %v5846_v28  ;;  %v5916_v26 = vld [vmem:[%s8308_s3 + $0x6ac] ss:$16 sps:$4 sm:$0xff]   ;;  %v5911_v28 = vld [vmem:[%s8308_s3 + $0x6a0] ss:$16 sps:$4 sm:$0xff]  }
 0x151   :  { %3920 = vmatprep.subr.bf16.mxu0 %v5851_v61  ;;  %4264 = vmatprep.subr.bf16.mxu1 %v5854_v3  ;;  %v5914_v61 = vld [vmem:[%s8308_s3 + $0x6a8] ss:$16 sps:$4 sm:$0xff]   ;;  %v5919_v3 = vld [vmem:[%s8308_s3 + $0x6c4] ss:$16 sps:$4 sm:$0xff]  }
 0x154   :  { %3921 = vmatpush1.bf16.msra.mxu0 %v5849_v6  ;;  %4265 = vmatpush1.bf16.msra.mxu1 %v5852_v30  ;;  %v5922_v6 = vld [vmem:[%s8308_s3 + $0x6cc] ss:$16 sps:$4 sm:$0xff]   ;;  %v5917_v30 = vld [vmem:[%s8308_s3 + $0x6c0] ss:$16 sps:$4 sm:$0xff]  }
 0x155   :  { %3922 = vmatprep.subr.bf16.mxu0 %v5857_v19  ;;  %4266 = vmatprep.subr.bf16.mxu1 %v5860_v24  ;;  %v5920_v19 = vld [vmem:[%s8308_s3 + $0x6c8] ss:$16 sps:$4 sm:$0xff]   ;;  %v5925_v24 = vld [vmem:[%s8308_s3 + $0x6e4] ss:$16 sps:$4 sm:$0xff]  }
 0x158   :  { %3923 = vmatpush1.bf16.msra.mxu0 %v5855_v27  ;;  %4267 = vmatpush1.bf16.msra.mxu1 %v5858_v34  ;;  %v5928_v27 = vld [vmem:[%s8308_s3 + $0x6ec] ss:$16 sps:$4 sm:$0xff]   ;;  %v5923_v34 = vld [vmem:[%s8308_s3 + $0x6e0] ss:$16 sps:$4 sm:$0xff]  }
 0x159   :  { %3924 = vmatprep.subr.bf16.mxu0 %v5863_v35  ;;  %4268 = vmatprep.subr.bf16.mxu1 %v5866_v36  ;;  %v5926_v35 = vld [vmem:[%s8308_s3 + $0x6e8] ss:$16 sps:$4 sm:$0xff]   ;;  %v5931_v36 = vld [vmem:[%s8308_s3 + $0x704] ss:$16 sps:$4 sm:$0xff]  }
 0x15c   :  { %3925 = vmatpush1.bf16.msra.mxu0 %v5861_v39  ;;  %4269 = vmatpush1.bf16.msra.mxu1 %v5864_v41  ;;  %v5929_v39 = vld [vmem:[%s8308_s3 + $0x700] ss:$16 sps:$4 sm:$0xff]   ;;  %v5932_v41 = vld [vmem:[%s8308_s3 + $0x708] ss:$16 sps:$4 sm:$0xff]  }
 0x15d   :  { %3926 = vmatprep.subr.bf16.mxu0 %v5870_v42  ;;  %4270 = vmatprep.subr.bf16.mxu1 %v5873_v63  ;;  %v5937_v42 = vld [vmem:[%s8308_s3 + $0x724] ss:$16 sps:$4 sm:$0xff]   ;;  %v5940_v63 = vld [vmem:[%s8308_s3 + $0x72c] ss:$16 sps:$4 sm:$0xff]  }
 0x160   :  { %3927 = vmatpush1.bf16.msra.mxu0 %v5868_v45  ;;  %4271 = vmatpush1.bf16.msra.mxu1 %v5871_v48  ;;  %v5938_v45 = vld [vmem:[%s8308_s3 + $0x728] ss:$16 sps:$4 sm:$0xff]   ;;  %v5943_v48 = vld [vmem:[%s8308_s3 + $0x744] ss:$16 sps:$4 sm:$0xff]  }
 0x161   :  { %3928 = vmatprep.subr.bf16.mxu0 %v5876_v49  ;;  %4272 = vmatprep.subr.bf16.mxu1 %v5879_v52  ;;  %v5946_v49 = vld [vmem:[%s8308_s3 + $0x74c] ss:$16 sps:$4 sm:$0xff]   ;;  %v5941_v52 = vld [vmem:[%s8308_s3 + $0x740] ss:$16 sps:$4 sm:$0xff]  }
 0x164   :  { %3929 = vmatpush1.bf16.msra.mxu0 %v5874_v56  ;;  %4273 = vmatpush1.bf16.msra.mxu1 %v5877_v57  ;;  %v5949_v56 = vld [vmem:[%s8308_s3 + $0x764] ss:$16 sps:$4 sm:$0xff]   ;;  %v5952_v57 = vld [vmem:[%s8308_s3 + $0x76c] ss:$16 sps:$4 sm:$0xff]  }
 0x165   :  { %3941 = vmatprep.subr.bf16.mxu0 %v5882_v59  ;;  %4285 = vmatprep.subr.bf16.mxu1 %v5885_v60  ;;  %v5947_v59 = vld [vmem:[%s8308_s3 + $0x760] ss:$16 sps:$4 sm:$0xff]   ;;  %v5950_v60 = vld [vmem:[%s8308_s3 + $0x768] ss:$16 sps:$4 sm:$0xff]  }
 0x167   :  { %3931 = vmatmul.mubr.bf16.vlgmr.msra.gmra.mrb[16].mxu0 %v728_v1  ;;  %4275 = vmatmul.mubr.bf16.vlgmr.msra.gmra.mrb[16].mxu1 %v728_v1  ;;  %v5956_v1 = vld [vmem:[%s8308_s3 + $0x788] ss:$16 sps:$4 sm:$0xff]  }
 0x168   :  { %3942 = vmatpush1.bf16.msra.mxu0 %v5880_v62  ;;  %4286 = vmatpush1.bf16.msra.mxu1 %v5883_v0  ;;  %v5958_v62 = vld [vmem:[%s8308_s3 + $0x78c] ss:$16 sps:$4 sm:$0xff]   ;;  %v5953_v0 = vld [vmem:[%s8308_s3 + $0x780] ss:$16 sps:$4 sm:$0xff]  }
 0x169   :  { %3943 = vmatprep.subr.bf16.mxu0 %v5888_v32  ;;  %4287 = vmatprep.subr.bf16.mxu1 %v5891_v40  ;;  %v5961_v32 = vld [vmem:[%s8308_s3 + $0x7a4] ss:$16 sps:$4 sm:$0xff]   ;;  %v5964_v40 = vld [vmem:[%s8308_s3 + $0x7ac] ss:$16 sps:$4 sm:$0xff]  }
 0x16a   :  { %3973 = vmatprep.mubr.bf16.mxu0 %v731_v47  ;;  %4317 = vmatprep.mubr.bf16.mxu1 %v731_v47  ;;  %v5959_v47 = vld [vmem:[%s8308_s3 + $0x7a0] ss:$16 sps:$4 sm:$0xff]  }
 0x16c   :  { %3944 = vmatpush1.bf16.msra.mxu0 %v5886_v31  ;;  %4288 = vmatpush1.bf16.msra.mxu1 %v5889_v5  ;;  %v5962_v31 = vld [vmem:[%s8308_s3 + $0x7a8] ss:$16 sps:$4 sm:$0xff]   ;;  %v5967_v5 = vld [vmem:[%s8308_s3 + $0x7c4] ss:$16 sps:$4 sm:$0xff]  }
 0x16d   :  { %3945 = vmatprep.subr.bf16.mxu0 %v5894_v46  ;;  %4289 = vmatprep.subr.bf16.mxu1 %v5897_v7  ;;  %v5970_v46 = vld [vmem:[%s8308_s3 + $0x7cc] ss:$16 sps:$4 sm:$0xff]   ;;  %v660_v7 = vpack.i.b16 %v6809_v58, %v6809_v58 }
 0x16e   :  { %v5976_v58 = vld [vmem:[%s8308_s3 + $0x7ec] ss:$16 sps:$4 sm:$0xff]  }
 0x170   :  { %3946 = vmatpush1.bf16.msra.mxu0 %v5892_v9  ;;  %4290 = vmatpush1.bf16.msra.mxu1 %v5895_v10  ;;  %v5965_v9 = vld [vmem:[%s8308_s3 + $0x7c0] ss:$16 sps:$4 sm:$0xff]   ;;  %v5968_v10 = vld [vmem:[%s8308_s3 + $0x7c8] ss:$16 sps:$4 sm:$0xff]  }
 0x171   :  { %3947 = vmatprep.subr.bf16.mxu0 %v5900_v11  ;;  %4291 = vmatprep.subr.bf16.mxu1 %v5903_v13  ;;  %v5973_v11 = vld [vmem:[%s8308_s3 + $0x7e4] ss:$16 sps:$4 sm:$0xff]   ;;  %v665_v13 = vrot.slane %v660_v7, %v6722_v51  ;;  %v6040_v7 = vld [vmem:[%s8308_s3 + $0x948] ss:$16 sps:$4 sm:$0xff]  }
 0x174   :  { %3948 = vmatpush1.bf16.msra.mxu0 %v5898_v14  ;;  %4292 = vmatpush1.bf16.msra.mxu1 %v5901_v15  ;;  %v5971_v14 = vld [vmem:[%s8308_s3 + $0x7e0] ss:$16 sps:$4 sm:$0xff]   ;;  %v5974_v15 = vld [vmem:[%s8308_s3 + $0x7e8] ss:$16 sps:$4 sm:$0xff]  }
 0x175   :  { %3949 = vmatprep.subr.bf16.mxu0 %v5906_v16  ;;  %4293 = vmatprep.subr.bf16.mxu1 %v5909_v17  ;;  %v5979_v16 = vld [vmem:[%s8308_s3 + $0x804] ss:$16 sps:$4 sm:$0xff]   ;;  %v5982_v17 = vld [vmem:[%s8308_s3 + $0x80c] ss:$16 sps:$4 sm:$0xff]  }
 0x178   :  { %3950 = vmatpush1.bf16.msra.mxu0 %v5904_v18  ;;  %4294 = vmatpush1.bf16.msra.mxu1 %v5907_v20  ;;  %v717_v18 = vadd.bf16 %v665_v13, %v487_v8  ;;  %v5977_v20 = vld [vmem:[%s8308_s3 + $0x800] ss:$16 sps:$4 sm:$0xff]   ;;  %v5986_v8 = vld [vmem:[%s8308_s3 + $0x828] ss:$16 sps:$4 sm:$0xff]   ;;  %v6051_v13 = vld [vmem:[%s8308_s3 + $0x984] ss:$16 sps:$4 sm:$0xff]  }
 0x179   :  { %3951 = vmatprep.subr.bf16.mxu0 %v5913_v25  ;;  %4295 = vmatprep.subr.bf16.mxu1 %v5916_v26  ;;  %v730_v25 = vmax.bf16 %v6393_v2, %v6797_v50  ;;  %v5980_v26 = vld [vmem:[%s8308_s3 + $0x808] ss:$16 sps:$4 sm:$0xff]   ;;  %v5983_v50 = vld [vmem:[%s8308_s3 + $0x820] ss:$16 sps:$4 sm:$0xff]  }
 0x17c   :  { %3952 = vmatpush1.bf16.msra.mxu0 %v5911_v28  ;;  %4296 = vmatpush1.bf16.msra.mxu1 %v5914_v61  ;;  %v733_v28 = vmax.bf16 %v6393_v2, %v717_v18  ;;  %v5991_v61 = vld [vmem:[%s8308_s3 + $0x844] ss:$16 sps:$4 sm:$0xff]   ;;  %v6060_v18 = vld [vmem:[%s8308_s3 + $0x9ac] ss:$16 sps:$4 sm:$0xff]  }
 0x17d   :  { %3953 = vmatprep.subr.bf16.mxu0 %v5919_v3  ;;  %4297 = vmatprep.subr.bf16.mxu1 %v5922_v6  ;;  %v5994_v3 = vld [vmem:[%s8308_s3 + $0x84c] ss:$16 sps:$4 sm:$0xff]   ;;  %v5989_v6 = vld [vmem:[%s8308_s3 + $0x840] ss:$16 sps:$4 sm:$0xff]  }
 0x180   :  { %3954 = vmatpush1.bf16.msra.mxu0 %v5917_v30  ;;  %4298 = vmatpush1.bf16.msra.mxu1 %v5920_v19  ;;  %v5992_v30 = vld [vmem:[%s8308_s3 + $0x848] ss:$16 sps:$4 sm:$0xff]   ;;  %v5997_v19 = vld [vmem:[%s8308_s3 + $0x864] ss:$16 sps:$4 sm:$0xff]  }
 0x181   :  { %3955 = vmatprep.subr.bf16.mxu0 %v5925_v24  ;;  %4299 = vmatprep.subr.bf16.mxu1 %v5928_v27  ;;  %v6000_v24 = vld [vmem:[%s8308_s3 + $0x86c] ss:$16 sps:$4 sm:$0xff]   ;;  %v5995_v27 = vld [vmem:[%s8308_s3 + $0x860] ss:$16 sps:$4 sm:$0xff]  }
 0x184   :  { %3956 = vmatpush1.bf16.msra.mxu0 %v5923_v34  ;;  %4300 = vmatpush1.bf16.msra.mxu1 %v5926_v35  ;;  %v5998_v34 = vld [vmem:[%s8308_s3 + $0x868] ss:$16 sps:$4 sm:$0xff]   ;;  %v6003_v35 = vld [vmem:[%s8308_s3 + $0x884] ss:$16 sps:$4 sm:$0xff]  }
 0x185   :  { %3957 = vmatprep.subr.bf16.mxu0 %v5931_v36  ;;  %4301 = vmatprep.subr.bf16.mxu1 %v5934_v37  ;;  %v6006_v36 = vld [vmem:[%s8308_s3 + $0x88c] ss:$16 sps:$4 sm:$0xff]   ;;  %v6001_v37 = vld [vmem:[%s8308_s3 + $0x880] ss:$16 sps:$4 sm:$0xff]  }
 0x188   :  { %3958 = vmatpush1.bf16.msra.mxu0 %v5929_v39  ;;  %4302 = vmatpush1.bf16.msra.mxu1 %v5932_v41  ;;  %v6004_v39 = vld [vmem:[%s8308_s3 + $0x888] ss:$16 sps:$4 sm:$0xff]   ;;  %v6009_v41 = vld [vmem:[%s8308_s3 + $0x8a4] ss:$16 sps:$4 sm:$0xff]  }
 0x189   :  { %3959 = vmatprep.subr.bf16.mxu0 %v5937_v42  ;;  %4303 = vmatprep.subr.bf16.mxu1 %v5940_v63  ;;  %v6012_v42 = vld [vmem:[%s8308_s3 + $0x8ac] ss:$16 sps:$4 sm:$0xff]   ;;  %v6007_v63 = vld [vmem:[%s8308_s3 + $0x8a0] ss:$16 sps:$4 sm:$0xff]  }
 0x18c   :  { %3960 = vmatpush1.bf16.msra.mxu0 %v5935_v44  ;;  %4304 = vmatpush1.bf16.msra.mxu1 %v5938_v45  ;;  %v6010_v44 = vld [vmem:[%s8308_s3 + $0x8a8] ss:$16 sps:$4 sm:$0xff]   ;;  %v6015_v45 = vld [vmem:[%s8308_s3 + $0x8c4] ss:$16 sps:$4 sm:$0xff]  }
 0x18d   :  { %3961 = vmatprep.subr.bf16.mxu0 %v5943_v48  ;;  %4305 = vmatprep.subr.bf16.mxu1 %v5946_v49  ;;  %v6018_v48 = vld [vmem:[%s8308_s3 + $0x8cc] ss:$16 sps:$4 sm:$0xff]   ;;  %v6013_v49 = vld [vmem:[%s8308_s3 + $0x8c0] ss:$16 sps:$4 sm:$0xff]  }
 0x190   :  { %3962 = vmatpush1.bf16.msra.mxu0 %v5941_v52  ;;  %4306 = vmatpush1.bf16.msra.mxu1 %v5944_v54  ;;  %v6016_v52 = vld [vmem:[%s8308_s3 + $0x8c8] ss:$16 sps:$4 sm:$0xff]   ;;  %v6021_v54 = vld [vmem:[%s8308_s3 + $0x8e4] ss:$16 sps:$4 sm:$0xff]  }
 0x191   :  { %3963 = vmatprep.subr.bf16.mxu0 %v5949_v56  ;;  %4307 = vmatprep.subr.bf16.mxu1 %v5952_v57  ;;  %v6024_v56 = vld [vmem:[%s8308_s3 + $0x8ec] ss:$16 sps:$4 sm:$0xff]   ;;  %v6019_v57 = vld [vmem:[%s8308_s3 + $0x8e0] ss:$16 sps:$4 sm:$0xff]  }
 0x194   :  { %3964 = vmatpush1.bf16.msra.mxu0 %v5947_v59  ;;  %4308 = vmatpush1.bf16.msra.mxu1 %v5950_v60  ;;  %v6022_v59 = vld [vmem:[%s8308_s3 + $0x8e8] ss:$16 sps:$4 sm:$0xff]   ;;  %v6027_v60 = vld [vmem:[%s8308_s3 + $0x904] ss:$16 sps:$4 sm:$0xff]  }
 0x195   :  { %3965 = vmatprep.subr.bf16.mxu0 %v5955_v53  ;;  %4309 = vmatprep.subr.bf16.mxu1 %v5958_v62  ;;  %v6030_v53 = vld [vmem:[%s8308_s3 + $0x90c] ss:$16 sps:$4 sm:$0xff]   ;;  %v6025_v62 = vld [vmem:[%s8308_s3 + $0x900] ss:$16 sps:$4 sm:$0xff]  }
 0x198   :  { %3966 = vmatpush1.bf16.msra.mxu0 %v5953_v0  ;;  %4310 = vmatpush1.bf16.msra.mxu1 %v5956_v1  ;;  %v6028_v0 = vld [vmem:[%s8308_s3 + $0x908] ss:$16 sps:$4 sm:$0xff]   ;;  %v6033_v1 = vld [vmem:[%s8308_s3 + $0x924] ss:$16 sps:$4 sm:$0xff]  }
 0x199   :  { %3967 = vmatprep.subr.bf16.mxu0 %v5961_v32  ;;  %4311 = vmatprep.subr.bf16.mxu1 %v5964_v40  ;;  %v6036_v32 = vld [vmem:[%s8308_s3 + $0x92c] ss:$16 sps:$4 sm:$0xff]   ;;  %v6031_v40 = vld [vmem:[%s8308_s3 + $0x920] ss:$16 sps:$4 sm:$0xff]  }
 0x19c   :  { %3968 = vmatpush1.bf16.msra.mxu0 %v5959_v47  ;;  %4312 = vmatpush1.bf16.msra.mxu1 %v5962_v31  ;;  %v6034_v47 = vld [vmem:[%s8308_s3 + $0x928] ss:$16 sps:$4 sm:$0xff]   ;;  %v6039_v31 = vld [vmem:[%s8308_s3 + $0x944] ss:$16 sps:$4 sm:$0xff]  }
 0x19d   :  { %3969 = vmatprep.subr.bf16.mxu0 %v5967_v5  ;;  %4313 = vmatprep.subr.bf16.mxu1 %v5970_v46  ;;  %v6042_v5 = vld [vmem:[%s8308_s3 + $0x94c] ss:$16 sps:$4 sm:$0xff]   ;;  %v6037_v46 = vld [vmem:[%s8308_s3 + $0x940] ss:$16 sps:$4 sm:$0xff]  }
 0x1a0   :  { %3970 = vmatpush1.bf16.msra.mxu0 %v5965_v9  ;;  %4314 = vmatpush1.bf16.msra.mxu1 %v5968_v10  ;;  %v6045_v9 = vld [vmem:[%s8308_s3 + $0x964] ss:$16 sps:$4 sm:$0xff]   ;;  %v6048_v10 = vld [vmem:[%s8308_s3 + $0x96c] ss:$16 sps:$4 sm:$0xff]  }
 0x1a1   :  { %3971 = vmatprep.subr.bf16.mxu0 %v5973_v11  ;;  %4315 = vmatprep.subr.bf16.mxu1 %v5976_v58  ;;  %v6043_v11 = vld [vmem:[%s8308_s3 + $0x960] ss:$16 sps:$4 sm:$0xff]   ;;  %v6046_v58 = vld [vmem:[%s8308_s3 + $0x968] ss:$16 sps:$4 sm:$0xff]  }
 0x1a4   :  { %3972 = vmatpush1.bf16.msra.mxu0 %v5971_v14  ;;  %4316 = vmatpush1.bf16.msra.mxu1 %v5974_v15  ;;  %v6054_v14 = vld [vmem:[%s8308_s3 + $0x98c] ss:$16 sps:$4 sm:$0xff]   ;;  %v6049_v15 = vld [vmem:[%s8308_s3 + $0x980] ss:$16 sps:$4 sm:$0xff]  }
 0x1a5   :  { %3984 = vmatprep.subr.bf16.mxu0 %v5979_v16  ;;  %4328 = vmatprep.subr.bf16.mxu1 %v5982_v17  ;;  %v6052_v16 = vld [vmem:[%s8308_s3 + $0x988] ss:$16 sps:$4 sm:$0xff]   ;;  %v6057_v17 = vld [vmem:[%s8308_s3 + $0x9a4] ss:$16 sps:$4 sm:$0xff]  }
 0x1a7   :  { %3974 = vmatmul.mubr.bf16.vlgmr.msra.gmra.mrb[16].mxu0 %v730_v25  ;;  %4318 = vmatmul.mubr.bf16.vlgmr.msra.gmra.mrb[16].mxu1 %v730_v25  ;;  %v6058_v25 = vld [vmem:[%s8308_s3 + $0x9a8] ss:$16 sps:$4 sm:$0xff]  }
 0x1a8   :  { %3985 = vmatpush1.bf16.msra.mxu0 %v5977_v20  ;;  %4016 = vmatprep.mubr.bf16.mxu0 %v733_v28  ;;  %v6055_v20 = vld [vmem:[%s8308_s3 + $0x9a0] ss:$16 sps:$4 sm:$0xff]  }
 0x1a9   :  { %4329 = vmatpush1.bf16.msra.mxu1 %v5980_v26  ;;  %4360 = vmatprep.mubr.bf16.mxu1 %v733_v28  ;;  %v6063_v26 = vld [vmem:[%s8308_s3 + $0x9c4] ss:$16 sps:$4 sm:$0xff]   ;;  %v6066_v28 = vld [vmem:[%s8308_s3 + $0x9cc] ss:$16 sps:$4 sm:$0xff]  }
 0x1aa   :  { %3986 = vmatprep.subr.bf16.mxu0 %v5985_v55  ;;  %4330 = vmatprep.subr.bf16.mxu1 %v5988_v4  ;;  %v6061_v55 = vld [vmem:[%s8308_s3 + $0x9c0] ss:$16 sps:$4 sm:$0xff]   ;;  %v6064_v4 = vld [vmem:[%s8308_s3 + $0x9c8] ss:$16 sps:$4 sm:$0xff]  }
 0x1ac   :  { %3987 = vmatpush1.bf16.msra.mxu0 %v5983_v50  ;;  %v6069_v50 = vld [vmem:[%s8308_s3 + $0x9e4] ss:$16 sps:$4 sm:$0xff]  }
 0x1ad   :  { %4331 = vmatpush1.bf16.msra.mxu1 %v5986_v8  ;;  %3988 = vmatprep.subr.bf16.mxu0 %v5991_v61  ;;  %v6072_v8 = vld [vmem:[%s8308_s3 + $0x9ec] ss:$16 sps:$4 sm:$0xff]   ;;  %v6067_v61 = vld [vmem:[%s8308_s3 + $0x9e0] ss:$16 sps:$4 sm:$0xff]  }
 0x1ae   :  { %4332 = vmatprep.subr.bf16.mxu1 %v5994_v3  ;;  %v6070_v3 = vld [vmem:[%s8308_s3 + $0x9e8] ss:$16 sps:$4 sm:$0xff]  }
 0x1b0   :  { %3989 = vmatpush1.bf16.msra.mxu0 %v5989_v6  ;;  %v6075_v6 = vld [vmem:[%s8308_s3 + $0xa04] ss:$16 sps:$4 sm:$0xff]  }
 0x1b1   :  { %4333 = vmatpush1.bf16.msra.mxu1 %v5992_v30  ;;  %3990 = vmatprep.subr.bf16.mxu0 %v5997_v19  ;;  %v6078_v30 = vld [vmem:[%s8308_s3 + $0xa0c] ss:$16 sps:$4 sm:$0xff]   ;;  %v6073_v19 = vld [vmem:[%s8308_s3 + $0xa00] ss:$16 sps:$4 sm:$0xff]  }
 0x1b2   :  { %4334 = vmatprep.subr.bf16.mxu1 %v6000_v24  ;;  %v732_v24 = vmax.bf16 %v6393_v2, %v6836_v23  ;;  %v6079_v23 = vld [vmem:[%s8308_s3 + $0xa20] ss:$16 sps:$4 sm:$0xff]  }
 0x1b4   :  { %3991 = vmatpush1.bf16.msra.mxu0 %v5995_v27  ;;  %v6076_v27 = vld [vmem:[%s8308_s3 + $0xa08] ss:$16 sps:$4 sm:$0xff]  }
 0x1b5   :  { %4335 = vmatpush1.bf16.msra.mxu1 %v5998_v34  ;;  %3992 = vmatprep.subr.bf16.mxu0 %v6003_v35  ;;  %v6081_v34 = vld [vmem:[%s8308_s3 + $0xa24] ss:$16 sps:$4 sm:$0xff]   ;;  %v735_v35 = vmax.bf16 %v6393_v2, %v6855_v38 }
 0x1b6   :  { %4336 = vmatprep.subr.bf16.mxu1 %v6006_v36  ;;  %v6084_v36 = vld [vmem:[%s8308_s3 + $0xa2c] ss:$16 sps:$4 sm:$0xff]   ;;  %v6087_v38 = vld [vmem:[%s8308_s3 + $0xa44] ss:$16 sps:$4 sm:$0xff]  }
 0x1b8   :  { %3993 = vmatpush1.bf16.msra.mxu0 %v6001_v37  ;;  %v6082_v37 = vld [vmem:[%s8308_s3 + $0xa28] ss:$16 sps:$4 sm:$0xff]  }
 0x1b9   :  { %4337 = vmatpush1.bf16.msra.mxu1 %v6004_v39  ;;  %3994 = vmatprep.subr.bf16.mxu0 %v6009_v41  ;;  %v6090_v39 = vld [vmem:[%s8308_s3 + $0xa4c] ss:$16 sps:$4 sm:$0xff]   ;;  %v6085_v41 = vld [vmem:[%s8308_s3 + $0xa40] ss:$16 sps:$4 sm:$0xff]  }
 0x1ba   :  { %4338 = vmatprep.subr.bf16.mxu1 %v6012_v42  ;;  %v6088_v42 = vld [vmem:[%s8308_s3 + $0xa48] ss:$16 sps:$4 sm:$0xff]  }
 0x1bc   :  { %3995 = vmatpush1.bf16.msra.mxu0 %v6007_v63  ;;  %v6093_v63 = vld [vmem:[%s8308_s3 + $0xa64] ss:$16 sps:$4 sm:$0xff]  }
 0x1bd   :  { %4339 = vmatpush1.bf16.msra.mxu1 %v6010_v44  ;;  %3996 = vmatprep.subr.bf16.mxu0 %v6015_v45  ;;  %v6096_v44 = vld [vmem:[%s8308_s3 + $0xa6c] ss:$16 sps:$4 sm:$0xff]   ;;  %v6091_v45 = vld [vmem:[%s8308_s3 + $0xa60] ss:$16 sps:$4 sm:$0xff]  }
 0x1be   :  { %4340 = vmatprep.subr.bf16.mxu1 %v6018_v48  ;;  %v6094_v48 = vld [vmem:[%s8308_s3 + $0xa68] ss:$16 sps:$4 sm:$0xff]  }
 0x1c0   :  { %3997 = vmatpush1.bf16.msra.mxu0 %v6013_v49  ;;  %v6099_v49 = vld [vmem:[%s8308_s3 + $0xa84] ss:$16 sps:$4 sm:$0xff]  }
 0x1c1   :  { %4341 = vmatpush1.bf16.msra.mxu1 %v6016_v52  ;;  %3998 = vmatprep.subr.bf16.mxu0 %v6021_v54  ;;  %v6102_v52 = vld [vmem:[%s8308_s3 + $0xa8c] ss:$16 sps:$4 sm:$0xff]   ;;  %v6097_v54 = vld [vmem:[%s8308_s3 + $0xa80] ss:$16 sps:$4 sm:$0xff]  }
 0x1c2   :  { %4342 = vmatprep.subr.bf16.mxu1 %v6024_v56  ;;  %v6100_v56 = vld [vmem:[%s8308_s3 + $0xa88] ss:$16 sps:$4 sm:$0xff]  }
 0x1c4   :  { %3999 = vmatpush1.bf16.msra.mxu0 %v6019_v57  ;;  %v6105_v57 = vld [vmem:[%s8308_s3 + $0xaa4] ss:$16 sps:$4 sm:$0xff]  }
 0x1c5   :  { %4343 = vmatpush1.bf16.msra.mxu1 %v6022_v59  ;;  %4000 = vmatprep.subr.bf16.mxu0 %v6027_v60  ;;  %v6108_v59 = vld [vmem:[%s8308_s3 + $0xaac] ss:$16 sps:$4 sm:$0xff]   ;;  %v6103_v60 = vld [vmem:[%s8308_s3 + $0xaa0] ss:$16 sps:$4 sm:$0xff]  }
 0x1c6   :  { %4344 = vmatprep.subr.bf16.mxu1 %v6030_v53  ;;  %v6106_v53 = vld [vmem:[%s8308_s3 + $0xaa8] ss:$16 sps:$4 sm:$0xff]  }
 0x1c8   :  { %4001 = vmatpush1.bf16.msra.mxu0 %v6025_v62  ;;  %v6111_v62 = vld [vmem:[%s8308_s3 + $0xac4] ss:$16 sps:$4 sm:$0xff]  }
 0x1c9   :  { %4345 = vmatpush1.bf16.msra.mxu1 %v6028_v0  ;;  %4002 = vmatprep.subr.bf16.mxu0 %v6033_v1  ;;  %v6114_v0 = vld [vmem:[%s8308_s3 + $0xacc] ss:$16 sps:$4 sm:$0xff]   ;;  %v6109_v1 = vld [vmem:[%s8308_s3 + $0xac0] ss:$16 sps:$4 sm:$0xff]  }
 0x1ca   :  { %4346 = vmatprep.subr.bf16.mxu1 %v6036_v32  ;;  %v6112_v32 = vld [vmem:[%s8308_s3 + $0xac8] ss:$16 sps:$4 sm:$0xff]  }
 0x1cc   :  { %4003 = vmatpush1.bf16.msra.mxu0 %v6031_v40  ;;  %v6117_v40 = vld [vmem:[%s8308_s3 + $0xae4] ss:$16 sps:$4 sm:$0xff]  }
 0x1cd   :  { %4347 = vmatpush1.bf16.msra.mxu1 %v6034_v47  ;;  %4004 = vmatprep.subr.bf16.mxu0 %v6039_v31  ;;  %v6120_v47 = vld [vmem:[%s8308_s3 + $0xaec] ss:$16 sps:$4 sm:$0xff]   ;;  %v6115_v31 = vld [vmem:[%s8308_s3 + $0xae0] ss:$16 sps:$4 sm:$0xff]  }
 0x1ce   :  { %4348 = vmatprep.subr.bf16.mxu1 %v6042_v5  ;;  %v6118_v5 = vld [vmem:[%s8308_s3 + $0xae8] ss:$16 sps:$4 sm:$0xff]  }
 0x1d0   :  { %4005 = vmatpush1.bf16.msra.mxu0 %v6037_v46  ;;  %v6123_v46 = vld [vmem:[%s8308_s3 + $0xb04] ss:$16 sps:$4 sm:$0xff]  }
 0x1d1   :  { %4349 = vmatpush1.bf16.msra.mxu1 %v6040_v7  ;;  %4006 = vmatprep.subr.bf16.mxu0 %v6045_v9  ;;  %v6126_v7 = vld [vmem:[%s8308_s3 + $0xb0c] ss:$16 sps:$4 sm:$0xff]   ;;  %v6121_v9 = vld [vmem:[%s8308_s3 + $0xb00] ss:$16 sps:$4 sm:$0xff]  }
 0x1d2   :  { %4350 = vmatprep.subr.bf16.mxu1 %v6048_v10  ;;  %v6124_v10 = vld [vmem:[%s8308_s3 + $0xb08] ss:$16 sps:$4 sm:$0xff]  }
 0x1d4   :  { %4007 = vmatpush1.bf16.msra.mxu0 %v6043_v11  ;;  %v6129_v11 = vld [vmem:[%s8308_s3 + $0xb24] ss:$16 sps:$4 sm:$0xff]  }
 0x1d5   :  { %4351 = vmatpush1.bf16.msra.mxu1 %v6046_v58  ;;  %4008 = vmatprep.subr.bf16.mxu0 %v6051_v13  ;;  %v6132_v58 = vld [vmem:[%s8308_s3 + $0xb2c] ss:$16 sps:$4 sm:$0xff]   ;;  %v6127_v13 = vld [vmem:[%s8308_s3 + $0xb20] ss:$16 sps:$4 sm:$0xff]  }
 0x1d6   :  { %4352 = vmatprep.subr.bf16.mxu1 %v6054_v14  ;;  %v6130_v14 = vld [vmem:[%s8308_s3 + $0xb28] ss:$16 sps:$4 sm:$0xff]  }
 0x1d8   :  { %4009 = vmatpush1.bf16.msra.mxu0 %v6049_v15  ;;  %v6135_v15 = vld [vmem:[%s8308_s3 + $0xb44] ss:$16 sps:$4 sm:$0xff]  }
 0x1d9   :  { %4353 = vmatpush1.bf16.msra.mxu1 %v6052_v16  ;;  %4010 = vmatprep.subr.bf16.mxu0 %v6057_v17  ;;  %v6138_v16 = vld [vmem:[%s8308_s3 + $0xb4c] ss:$16 sps:$4 sm:$0xff]   ;;  %v6133_v17 = vld [vmem:[%s8308_s3 + $0xb40] ss:$16 sps:$4 sm:$0xff]  }
 0x1da   :  { %4354 = vmatprep.subr.bf16.mxu1 %v6060_v18  ;;  %v6136_v18 = vld [vmem:[%s8308_s3 + $0xb48] ss:$16 sps:$4 sm:$0xff]  }
 0x1dc   :  { %4011 = vmatpush1.bf16.msra.mxu0 %v6055_v20  ;;  %v6141_v20 = vld [vmem:[%s8308_s3 + $0xb64] ss:$16 sps:$4 sm:$0xff]  }
 0x1dd   :  { %4355 = vmatpush1.bf16.msra.mxu1 %v6058_v25  ;;  %4012 = vmatprep.subr.bf16.mxu0 %v6063_v26  ;;  %v6144_v25 = vld [vmem:[%s8308_s3 + $0xb6c] ss:$16 sps:$4 sm:$0xff]   ;;  %v6139_v26 = vld [vmem:[%s8308_s3 + $0xb60] ss:$16 sps:$4 sm:$0xff]  }
 0x1de   :  { %4356 = vmatprep.subr.bf16.mxu1 %v6066_v28  ;;  %v6142_v28 = vld [vmem:[%s8308_s3 + $0xb68] ss:$16 sps:$4 sm:$0xff]  }
 0x1e0   :  { %4013 = vmatpush1.bf16.msra.mxu0 %v6061_v55  ;;  %v6147_v55 = vld [vmem:[%s8308_s3 + $0xb84] ss:$16 sps:$4 sm:$0xff]  }
 0x1e1   :  { %4357 = vmatpush1.bf16.msra.mxu1 %v6064_v4  ;;  %4014 = vmatprep.subr.bf16.mxu0 %v6069_v50  ;;  %v6150_v4 = vld [vmem:[%s8308_s3 + $0xb8c] ss:$16 sps:$4 sm:$0xff]   ;;  %v6145_v50 = vld [vmem:[%s8308_s3 + $0xb80] ss:$16 sps:$4 sm:$0xff]  }
 0x1e2   :  { %4358 = vmatprep.subr.bf16.mxu1 %v6072_v8  ;;  %v6148_v8 = vld [vmem:[%s8308_s3 + $0xb88] ss:$16 sps:$4 sm:$0xff]  }
 0x1e4   :  { %4015 = vmatpush1.bf16.msra.mxu0 %v6067_v61  ;;  %v6153_v61 = vld [vmem:[%s8308_s3 + $0xba4] ss:$16 sps:$4 sm:$0xff]  }
 0x1e5   :  { %4359 = vmatpush1.bf16.msra.mxu1 %v6070_v3  ;;  %4027 = vmatprep.subr.bf16.mxu0 %v6075_v6  ;;  %v6156_v3 = vld [vmem:[%s8308_s3 + $0xbac] ss:$16 sps:$4 sm:$0xff]   ;;  %v6151_v6 = vld [vmem:[%s8308_s3 + $0xba0] ss:$16 sps:$4 sm:$0xff]  }
 0x1e6   :  { %4371 = vmatprep.subr.bf16.mxu1 %v6078_v30  ;;  %v6154_v30 = vld [vmem:[%s8308_s3 + $0xba8] ss:$16 sps:$4 sm:$0xff]  }
 0x1e7   :  { %4017 = vmatmul.mubr.bf16.vlgmr.msra.gmra.mrb[16].mxu0 %v732_v24 }
 0x1e8   :  { %4361 = vmatmul.mubr.bf16.vlgmr.msra.gmra.mrb[16].mxu1 %v732_v24  ;;  %4028 = vmatpush1.bf16.msra.mxu0 %v6073_v19  ;;  %v6159_v19 = vld [vmem:[%s8308_s3 + $0xbc4] ss:$16 sps:$4 sm:$0xff]   ;;  %v6162_v24 = vld [vmem:[%s8308_s3 + $0xbcc] ss:$16 sps:$4 sm:$0xff]  }
 0x1e9   :  { %4059 = vmatprep.mubr.bf16.mxu0 %v735_v35  ;;  %4372 = vmatpush1.bf16.msra.mxu1 %v6076_v27  ;;  %v6157_v27 = vld [vmem:[%s8308_s3 + $0xbc0] ss:$16 sps:$4 sm:$0xff]  }
 0x1ea   :  { %4403 = vmatprep.mubr.bf16.mxu1 %v735_v35  ;;  %4029 = vmatprep.subr.bf16.mxu0 %v6081_v34  ;;  %v6160_v34 = vld [vmem:[%s8308_s3 + $0xbc8] ss:$16 sps:$4 sm:$0xff]   ;;  %v6165_v35 = vld [vmem:[%s8308_s3 + $0xbe4] ss:$16 sps:$4 sm:$0xff]  }
 0x1eb   :  { %4373 = vmatprep.subr.bf16.mxu1 %v6084_v36  ;;  %v6168_v36 = vld [vmem:[%s8308_s3 + $0xbec] ss:$16 sps:$4 sm:$0xff]  }
 0x1ec   :  { %4030 = vmatpush1.bf16.msra.mxu0 %v6079_v23  ;;  %v6163_v23 = vld [vmem:[%s8308_s3 + $0xbe0] ss:$16 sps:$4 sm:$0xff]  }
 0x1ed   :  { %4374 = vmatpush1.bf16.msra.mxu1 %v6082_v37  ;;  %4031 = vmatprep.subr.bf16.mxu0 %v6087_v38  ;;  %v6166_v37 = vld [vmem:[%s8308_s3 + $0xbe8] ss:$16 sps:$4 sm:$0xff]   ;;  %v6171_v38 = vld [vmem:[%s8308_s3 + $0xc04] ss:$16 sps:$4 sm:$0xff]  }
 0x1ee   :  { %4375 = vmatprep.subr.bf16.mxu1 %v6090_v39  ;;  %v6174_v39 = vld [vmem:[%s8308_s3 + $0xc0c] ss:$16 sps:$4 sm:$0xff]  }
 0x1f0   :  { %4032 = vmatpush1.bf16.msra.mxu0 %v6085_v41  ;;  %v6169_v41 = vld [vmem:[%s8308_s3 + $0xc00] ss:$16 sps:$4 sm:$0xff]  }
 0x1f1   :  { %4376 = vmatpush1.bf16.msra.mxu1 %v6088_v42  ;;  %4033 = vmatprep.subr.bf16.mxu0 %v6093_v63  ;;  %v734_v42 = vmax.bf16 %v6393_v2, %v6847_v33  ;;  %v6172_v63 = vld [vmem:[%s8308_s3 + $0xc08] ss:$16 sps:$4 sm:$0xff]   ;;  %v6175_v33 = vld [vmem:[%s8308_s3 + $0xc20] ss:$16 sps:$4 sm:$0xff]  }
 0x1f2   :  { %4377 = vmatprep.subr.bf16.mxu1 %v6096_v44  ;;  %v6177_v44 = vld [vmem:[%s8308_s3 + $0xc24] ss:$16 sps:$4 sm:$0xff]  }
 0x1f4   :  { %4034 = vmatpush1.bf16.msra.mxu0 %v6091_v45  ;;  %v737_v45 = vmax.bf16 %v6393_v2, %v6888_v21  ;;  %v6183_v21 = vld [vmem:[%s8308_s3 + $0xc44] ss:$16 sps:$4 sm:$0xff]  }
 0x1f5   :  { %4378 = vmatpush1.bf16.msra.mxu1 %v6094_v48  ;;  %4035 = vmatprep.subr.bf16.mxu0 %v6099_v49  ;;  %v6180_v48 = vld [vmem:[%s8308_s3 + $0xc2c] ss:$16 sps:$4 sm:$0xff]   ;;  %v6178_v49 = vld [vmem:[%s8308_s3 + $0xc28] ss:$16 sps:$4 sm:$0xff]  }
 0x1f6   :  { %4379 = vmatprep.subr.bf16.mxu1 %v6102_v52  ;;  %v6186_v52 = vld [vmem:[%s8308_s3 + $0xc4c] ss:$16 sps:$4 sm:$0xff]  }
 0x1f8   :  { %4036 = vmatpush1.bf16.msra.mxu0 %v6097_v54  ;;  %v6181_v54 = vld [vmem:[%s8308_s3 + $0xc40] ss:$16 sps:$4 sm:$0xff]  }
 0x1f9   :  { %4380 = vmatpush1.bf16.msra.mxu1 %v6100_v56  ;;  %4037 = vmatprep.subr.bf16.mxu0 %v6105_v57  ;;  %v6184_v56 = vld [vmem:[%s8308_s3 + $0xc48] ss:$16 sps:$4 sm:$0xff]   ;;  %v6189_v57 = vld [vmem:[%s8308_s3 + $0xc64] ss:$16 sps:$4 sm:$0xff]  }
 0x1fa   :  { %4381 = vmatprep.subr.bf16.mxu1 %v6108_v59  ;;  %v6192_v59 = vld [vmem:[%s8308_s3 + $0xc6c] ss:$16 sps:$4 sm:$0xff]  }
 0x1fc   :  { %4038 = vmatpush1.bf16.msra.mxu0 %v6103_v60  ;;  %v6187_v60 = vld [vmem:[%s8308_s3 + $0xc60] ss:$16 sps:$4 sm:$0xff]  }
 0x1fd   :  { %4382 = vmatpush1.bf16.msra.mxu1 %v6106_v53  ;;  %4039 = vmatprep.subr.bf16.mxu0 %v6111_v62  ;;  %v6190_v53 = vld [vmem:[%s8308_s3 + $0xc68] ss:$16 sps:$4 sm:$0xff]   ;;  %v6195_v62 = vld [vmem:[%s8308_s3 + $0xc84] ss:$16 sps:$4 sm:$0xff]  }
 0x1fe   :  { %4383 = vmatprep.subr.bf16.mxu1 %v6114_v0  ;;  %v6198_v0 = vld [vmem:[%s8308_s3 + $0xc8c] ss:$16 sps:$4 sm:$0xff]  }
 0x200   :  { %4040 = vmatpush1.bf16.msra.mxu0 %v6109_v1  ;;  %v6193_v1 = vld [vmem:[%s8308_s3 + $0xc80] ss:$16 sps:$4 sm:$0xff]  }
 0x201   :  { %4384 = vmatpush1.bf16.msra.mxu1 %v6112_v32  ;;  %4041 = vmatprep.subr.bf16.mxu0 %v6117_v40  ;;  %v6196_v32 = vld [vmem:[%s8308_s3 + $0xc88] ss:$16 sps:$4 sm:$0xff]   ;;  %v6201_v40 = vld [vmem:[%s8308_s3 + $0xca4] ss:$16 sps:$4 sm:$0xff]  }
 0x202   :  { %4385 = vmatprep.subr.bf16.mxu1 %v6120_v47  ;;  %v6204_v47 = vld [vmem:[%s8308_s3 + $0xcac] ss:$16 sps:$4 sm:$0xff]  }
 0x204   :  { %4042 = vmatpush1.bf16.msra.mxu0 %v6115_v31  ;;  %v6199_v31 = vld [vmem:[%s8308_s3 + $0xca0] ss:$16 sps:$4 sm:$0xff]  }
 0x205   :  { %4386 = vmatpush1.bf16.msra.mxu1 %v6118_v5  ;;  %4043 = vmatprep.subr.bf16.mxu0 %v6123_v46  ;;  %v6202_v5 = vld [vmem:[%s8308_s3 + $0xca8] ss:$16 sps:$4 sm:$0xff]   ;;  %v6207_v46 = vld [vmem:[%s8308_s3 + $0xcc4] ss:$16 sps:$4 sm:$0xff]  }
 0x206   :  { %4387 = vmatprep.subr.bf16.mxu1 %v6126_v7  ;;  %v6210_v7 = vld [vmem:[%s8308_s3 + $0xccc] ss:$16 sps:$4 sm:$0xff]  }
 0x208   :  { %4044 = vmatpush1.bf16.msra.mxu0 %v6121_v9  ;;  %v6205_v9 = vld [vmem:[%s8308_s3 + $0xcc0] ss:$16 sps:$4 sm:$0xff]  }
 0x209   :  { %4388 = vmatpush1.bf16.msra.mxu1 %v6124_v10  ;;  %4045 = vmatprep.subr.bf16.mxu0 %v6129_v11  ;;  %v6208_v10 = vld [vmem:[%s8308_s3 + $0xcc8] ss:$16 sps:$4 sm:$0xff]   ;;  %v6213_v11 = vld [vmem:[%s8308_s3 + $0xce4] ss:$16 sps:$4 sm:$0xff]  }
 0x20a   :  { %4389 = vmatprep.subr.bf16.mxu1 %v6132_v58  ;;  %v6211_v58 = vld [vmem:[%s8308_s3 + $0xce0] ss:$16 sps:$4 sm:$0xff]  }
 0x20c   :  { %4046 = vmatpush1.bf16.msra.mxu0 %v6127_v13  ;;  %v6216_v13 = vld [vmem:[%s8308_s3 + $0xcec] ss:$16 sps:$4 sm:$0xff]  }
 0x20d   :  { %4390 = vmatpush1.bf16.msra.mxu1 %v6130_v14  ;;  %4047 = vmatprep.subr.bf16.mxu0 %v6135_v15  ;;  %v6214_v14 = vld [vmem:[%s8308_s3 + $0xce8] ss:$16 sps:$4 sm:$0xff]   ;;  %v6219_v15 = vld [vmem:[%s8308_s3 + $0xd04] ss:$16 sps:$4 sm:$0xff]  }
 0x20e   :  { %4391 = vmatprep.subr.bf16.mxu1 %v6138_v16  ;;  %v6222_v16 = vld [vmem:[%s8308_s3 + $0xd0c] ss:$16 sps:$4 sm:$0xff]  }
 0x210   :  { %4048 = vmatpush1.bf16.msra.mxu0 %v6133_v17  ;;  %v6217_v17 = vld [vmem:[%s8308_s3 + $0xd00] ss:$16 sps:$4 sm:$0xff]  }
 0x211   :  { %4392 = vmatpush1.bf16.msra.mxu1 %v6136_v18  ;;  %4049 = vmatprep.subr.bf16.mxu0 %v6141_v20  ;;  %v6220_v18 = vld [vmem:[%s8308_s3 + $0xd08] ss:$16 sps:$4 sm:$0xff]   ;;  %v6225_v20 = vld [vmem:[%s8308_s3 + $0xd24] ss:$16 sps:$4 sm:$0xff]  }
 0x212   :  { %4393 = vmatprep.subr.bf16.mxu1 %v6144_v25  ;;  %v6228_v25 = vld [vmem:[%s8308_s3 + $0xd2c] ss:$16 sps:$4 sm:$0xff]  }
 0x214   :  { %4050 = vmatpush1.bf16.msra.mxu0 %v6139_v26  ;;  %v6223_v26 = vld [vmem:[%s8308_s3 + $0xd20] ss:$16 sps:$4 sm:$0xff]  }
 0x215   :  { %4394 = vmatpush1.bf16.msra.mxu1 %v6142_v28  ;;  %4051 = vmatprep.subr.bf16.mxu0 %v6147_v55  ;;  %v6226_v28 = vld [vmem:[%s8308_s3 + $0xd28] ss:$16 sps:$4 sm:$0xff]   ;;  %v6231_v55 = vld [vmem:[%s8308_s3 + $0xd44] ss:$16 sps:$4 sm:$0xff]  }
 0x216   :  { %4395 = vmatprep.subr.bf16.mxu1 %v6150_v4  ;;  %v6234_v4 = vld [vmem:[%s8308_s3 + $0xd4c] ss:$16 sps:$4 sm:$0xff]  }
 0x218   :  { %4052 = vmatpush1.bf16.msra.mxu0 %v6145_v50  ;;  %v6229_v50 = vld [vmem:[%s8308_s3 + $0xd40] ss:$16 sps:$4 sm:$0xff]  }
 0x219   :  { %4396 = vmatpush1.bf16.msra.mxu1 %v6148_v8  ;;  %4053 = vmatprep.subr.bf16.mxu0 %v6153_v61  ;;  %v6232_v8 = vld [vmem:[%s8308_s3 + $0xd48] ss:$16 sps:$4 sm:$0xff]   ;;  %v6237_v61 = vld [vmem:[%s8308_s3 + $0xd64] ss:$16 sps:$4 sm:$0xff]  }
 0x21a   :  { %4397 = vmatprep.subr.bf16.mxu1 %v6156_v3  ;;  %v6240_v3 = vld [vmem:[%s8308_s3 + $0xd6c] ss:$16 sps:$4 sm:$0xff]  }
 0x21c   :  { %4054 = vmatpush1.bf16.msra.mxu0 %v6151_v6  ;;  %v6235_v6 = vld [vmem:[%s8308_s3 + $0xd60] ss:$16 sps:$4 sm:$0xff]  }
 0x21d   :  { %4398 = vmatpush1.bf16.msra.mxu1 %v6154_v30  ;;  %4055 = vmatprep.subr.bf16.mxu0 %v6159_v19  ;;  %v6238_v30 = vld [vmem:[%s8308_s3 + $0xd68] ss:$16 sps:$4 sm:$0xff]   ;;  %v6243_v19 = vld [vmem:[%s8308_s3 + $0xd84] ss:$16 sps:$4 sm:$0xff]  }
 0x21e   :  { %4399 = vmatprep.subr.bf16.mxu1 %v6162_v24  ;;  %v6246_v24 = vld [vmem:[%s8308_s3 + $0xd8c] ss:$16 sps:$4 sm:$0xff]  }
 0x220   :  { %4056 = vmatpush1.bf16.msra.mxu0 %v6157_v27  ;;  %v6241_v27 = vld [vmem:[%s8308_s3 + $0xd80] ss:$16 sps:$4 sm:$0xff]  }
 0x221   :  { %4400 = vmatpush1.bf16.msra.mxu1 %v6160_v34  ;;  %4057 = vmatprep.subr.bf16.mxu0 %v6165_v35  ;;  %v6244_v34 = vld [vmem:[%s8308_s3 + $0xd88] ss:$16 sps:$4 sm:$0xff]   ;;  %v6249_v35 = vld [vmem:[%s8308_s3 + $0xda4] ss:$16 sps:$4 sm:$0xff]  }
 0x222   :  { %4401 = vmatprep.subr.bf16.mxu1 %v6168_v36  ;;  %v6252_v36 = vld [vmem:[%s8308_s3 + $0xdac] ss:$16 sps:$4 sm:$0xff]  }
 0x224   :  { %4058 = vmatpush1.bf16.msra.mxu0 %v6163_v23  ;;  %v6247_v23 = vld [vmem:[%s8308_s3 + $0xda0] ss:$16 sps:$4 sm:$0xff]  }
 0x225   :  { %4402 = vmatpush1.bf16.msra.mxu1 %v6166_v37  ;;  %4070 = vmatprep.subr.bf16.mxu0 %v6171_v38  ;;  %v6250_v37 = vld [vmem:[%s8308_s3 + $0xda8] ss:$16 sps:$4 sm:$0xff]   ;;  %v6255_v38 = vld [vmem:[%s8308_s3 + $0xdc4] ss:$16 sps:$4 sm:$0xff]  }
 0x226   :  { %4414 = vmatprep.subr.bf16.mxu1 %v6174_v39  ;;  %v6258_v39 = vld [vmem:[%s8308_s3 + $0xdcc] ss:$16 sps:$4 sm:$0xff]  }
 0x227   :  { %4060 = vmatmul.mubr.bf16.vlgmr.msra.gmra.mrb[16].mxu0 %v734_v42 }
 0x228   :  { %4404 = vmatmul.mubr.bf16.vlgmr.msra.gmra.mrb[16].mxu1 %v734_v42  ;;  %4071 = vmatpush1.bf16.msra.mxu0 %v6169_v41  ;;  %v6253_v41 = vld [vmem:[%s8308_s3 + $0xdc0] ss:$16 sps:$4 sm:$0xff]   ;;  %v6256_v42 = vld [vmem:[%s8308_s3 + $0xdc8] ss:$16 sps:$4 sm:$0xff]  }
 0x229   :  { %4102 = vmatprep.mubr.bf16.mxu0 %v737_v45  ;;  %4415 = vmatpush1.bf16.msra.mxu1 %v6172_v63  ;;  %v6261_v63 = vld [vmem:[%s8308_s3 + $0xde4] ss:$16 sps:$4 sm:$0xff]  }
 0x22a   :  { %4446 = vmatprep.mubr.bf16.mxu1 %v737_v45  ;;  %4072 = vmatprep.subr.bf16.mxu0 %v6177_v44  ;;  %v6264_v44 = vld [vmem:[%s8308_s3 + $0xdec] ss:$16 sps:$4 sm:$0xff]   ;;  %v6259_v45 = vld [vmem:[%s8308_s3 + $0xde0] ss:$16 sps:$4 sm:$0xff]  }
 0x22b   :  { %4416 = vmatprep.subr.bf16.mxu1 %v6180_v48  ;;  %v6262_v48 = vld [vmem:[%s8308_s3 + $0xde8] ss:$16 sps:$4 sm:$0xff]  }
 0x22c   :  { %4073 = vmatpush1.bf16.msra.mxu0 %v6175_v33  ;;  %v6267_v33 = vld [vmem:[%s8308_s3 + $0xe04] ss:$16 sps:$4 sm:$0xff]  }
 0x22d   :  { %4417 = vmatpush1.bf16.msra.mxu1 %v6178_v49  ;;  %4074 = vmatprep.subr.bf16.mxu0 %v6183_v21  ;;  %v6270_v49 = vld [vmem:[%s8308_s3 + $0xe0c] ss:$16 sps:$4 sm:$0xff]   ;;  %v6265_v21 = vld [vmem:[%s8308_s3 + $0xe00] ss:$16 sps:$4 sm:$0xff]  }
 0x22e   :  { %4418 = vmatprep.subr.bf16.mxu1 %v6186_v52  ;;  %v736_v52 = vmax.bf16 %v6393_v2, %v6872_v12  ;;  %v6271_v12 = vld [vmem:[%s8308_s3 + $0xe20] ss:$16 sps:$4 sm:$0xff]  }
 0x230   :  { %4075 = vmatpush1.bf16.msra.mxu0 %v6181_v54  ;;  %v6268_v54 = vld [vmem:[%s8308_s3 + $0xe08] ss:$16 sps:$4 sm:$0xff]  }
 0x231   :  { %4419 = vmatpush1.bf16.msra.mxu1 %v6184_v56  ;;  %4076 = vmatprep.subr.bf16.mxu0 %v6189_v57  ;;  %v6273_v56 = vld [vmem:[%s8308_s3 + $0xe24] ss:$16 sps:$4 sm:$0xff]   ;;  %v739_v57 = vmax.bf16 %v6393_v2, %v6899_v29 }
 0x232   :  { %4420 = vmatprep.subr.bf16.mxu1 %v6192_v59  ;;  %v6276_v59 = vld [vmem:[%s8308_s3 + $0xe2c] ss:$16 sps:$4 sm:$0xff]   ;;  %v6279_v29 = vld [vmem:[%s8308_s3 + $0xe44] ss:$16 sps:$4 sm:$0xff]  }
 0x234   :  { %4077 = vmatpush1.bf16.msra.mxu0 %v6187_v60  ;;  %v6274_v60 = vld [vmem:[%s8308_s3 + $0xe28] ss:$16 sps:$4 sm:$0xff]  }
 0x235   :  { %4421 = vmatpush1.bf16.msra.mxu1 %v6190_v53  ;;  %4078 = vmatprep.subr.bf16.mxu0 %v6195_v62  ;;  %v6282_v53 = vld [vmem:[%s8308_s3 + $0xe4c] ss:$16 sps:$4 sm:$0xff]   ;;  %v6277_v62 = vld [vmem:[%s8308_s3 + $0xe40] ss:$16 sps:$4 sm:$0xff]  }
 0x236   :  { %4422 = vmatprep.subr.bf16.mxu1 %v6198_v0  ;;  %v6280_v0 = vld [vmem:[%s8308_s3 + $0xe48] ss:$16 sps:$4 sm:$0xff]  }
 0x238   :  { %4079 = vmatpush1.bf16.msra.mxu0 %v6193_v1  ;;  %v6285_v1 = vld [vmem:[%s8308_s3 + $0xe64] ss:$16 sps:$4 sm:$0xff]  }
 0x239   :  { %4423 = vmatpush1.bf16.msra.mxu1 %v6196_v32  ;;  %4080 = vmatprep.subr.bf16.mxu0 %v6201_v40  ;;  %v6288_v32 = vld [vmem:[%s8308_s3 + $0xe6c] ss:$16 sps:$4 sm:$0xff]   ;;  %v6283_v40 = vld [vmem:[%s8308_s3 + $0xe60] ss:$16 sps:$4 sm:$0xff]  }
 0x23a   :  { %4424 = vmatprep.subr.bf16.mxu1 %v6204_v47  ;;  %v6286_v47 = vld [vmem:[%s8308_s3 + $0xe68] ss:$16 sps:$4 sm:$0xff]  }
 0x23c   :  { %4081 = vmatpush1.bf16.msra.mxu0 %v6199_v31  ;;  %v6291_v31 = vld [vmem:[%s8308_s3 + $0xe84] ss:$16 sps:$4 sm:$0xff]  }
 0x23d   :  { %4425 = vmatpush1.bf16.msra.mxu1 %v6202_v5  ;;  %4082 = vmatprep.subr.bf16.mxu0 %v6207_v46  ;;  %v6294_v5 = vld [vmem:[%s8308_s3 + $0xe8c] ss:$16 sps:$4 sm:$0xff]   ;;  %v6289_v46 = vld [vmem:[%s8308_s3 + $0xe80] ss:$16 sps:$4 sm:$0xff]  }
 0x23e   :  { %4426 = vmatprep.subr.bf16.mxu1 %v6210_v7  ;;  %v6292_v7 = vld [vmem:[%s8308_s3 + $0xe88] ss:$16 sps:$4 sm:$0xff]  }
 0x240   :  { %4083 = vmatpush1.bf16.msra.mxu0 %v6205_v9  ;;  %v6297_v9 = vld [vmem:[%s8308_s3 + $0xea4] ss:$16 sps:$4 sm:$0xff]  }
 0x241   :  { %4427 = vmatpush1.bf16.msra.mxu1 %v6208_v10  ;;  %4084 = vmatprep.subr.bf16.mxu0 %v6213_v11  ;;  %v6300_v10 = vld [vmem:[%s8308_s3 + $0xeac] ss:$16 sps:$4 sm:$0xff]   ;;  %v6295_v11 = vld [vmem:[%s8308_s3 + $0xea0] ss:$16 sps:$4 sm:$0xff]  }
 0x242   :  { %4428 = vmatprep.subr.bf16.mxu1 %v6216_v13  ;;  %v6303_v13 = vld [vmem:[%s8308_s3 + $0xec4] ss:$16 sps:$4 sm:$0xff]  }
 0x244   :  { %4085 = vmatpush1.bf16.msra.mxu0 %v6211_v58  ;;  %v6298_v58 = vld [vmem:[%s8308_s3 + $0xea8] ss:$16 sps:$4 sm:$0xff]  }
 0x245   :  { %4429 = vmatpush1.bf16.msra.mxu1 %v6214_v14  ;;  %4086 = vmatprep.subr.bf16.mxu0 %v6219_v15  ;;  %v6306_v14 = vld [vmem:[%s8308_s3 + $0xecc] ss:$16 sps:$4 sm:$0xff]   ;;  %v6301_v15 = vld [vmem:[%s8308_s3 + $0xec0] ss:$16 sps:$4 sm:$0xff]  }
 0x246   :  { %4430 = vmatprep.subr.bf16.mxu1 %v6222_v16  ;;  %v6304_v16 = vld [vmem:[%s8308_s3 + $0xec8] ss:$16 sps:$4 sm:$0xff]  }
 0x248   :  { %4087 = vmatpush1.bf16.msra.mxu0 %v6217_v17  ;;  %v6309_v17 = vld [vmem:[%s8308_s3 + $0xee4] ss:$16 sps:$4 sm:$0xff]  }
 0x249   :  { %4431 = vmatpush1.bf16.msra.mxu1 %v6220_v18  ;;  %4088 = vmatprep.subr.bf16.mxu0 %v6225_v20  ;;  %v6312_v18 = vld [vmem:[%s8308_s3 + $0xeec] ss:$16 sps:$4 sm:$0xff]   ;;  %v6307_v20 = vld [vmem:[%s8308_s3 + $0xee0] ss:$16 sps:$4 sm:$0xff]  }
 0x24a   :  { %4432 = vmatprep.subr.bf16.mxu1 %v6228_v25  ;;  %v6310_v25 = vld [vmem:[%s8308_s3 + $0xee8] ss:$16 sps:$4 sm:$0xff]  }
 0x24c   :  { %4089 = vmatpush1.bf16.msra.mxu0 %v6223_v26  ;;  %v6315_v26 = vld [vmem:[%s8308_s3 + $0xf04] ss:$16 sps:$4 sm:$0xff]  }
 0x24d   :  { %4433 = vmatpush1.bf16.msra.mxu1 %v6226_v28  ;;  %4090 = vmatprep.subr.bf16.mxu0 %v6231_v55  ;;  %v6318_v28 = vld [vmem:[%s8308_s3 + $0xf0c] ss:$16 sps:$4 sm:$0xff]   ;;  %v6313_v55 = vld [vmem:[%s8308_s3 + $0xf00] ss:$16 sps:$4 sm:$0xff]  }
 0x24e   :  { %4434 = vmatprep.subr.bf16.mxu1 %v6234_v4  ;;  %v6316_v4 = vld [vmem:[%s8308_s3 + $0xf08] ss:$16 sps:$4 sm:$0xff]  }
 0x250   :  { %4091 = vmatpush1.bf16.msra.mxu0 %v6229_v50  ;;  %v6321_v50 = vld [vmem:[%s8308_s3 + $0xf24] ss:$16 sps:$4 sm:$0xff]  }
 0x251   :  { %4435 = vmatpush1.bf16.msra.mxu1 %v6232_v8  ;;  %4092 = vmatprep.subr.bf16.mxu0 %v6237_v61  ;;  %v6324_v8 = vld [vmem:[%s8308_s3 + $0xf2c] ss:$16 sps:$4 sm:$0xff]   ;;  %v6319_v61 = vld [vmem:[%s8308_s3 + $0xf20] ss:$16 sps:$4 sm:$0xff]  }
 0x252   :  { %4436 = vmatprep.subr.bf16.mxu1 %v6240_v3  ;;  %v6322_v3 = vld [vmem:[%s8308_s3 + $0xf28] ss:$16 sps:$4 sm:$0xff]  }
 0x254   :  { %4093 = vmatpush1.bf16.msra.mxu0 %v6235_v6  ;;  %v6327_v6 = vld [vmem:[%s8308_s3 + $0xf44] ss:$16 sps:$4 sm:$0xff]  }
 0x255   :  { %4437 = vmatpush1.bf16.msra.mxu1 %v6238_v30  ;;  %4094 = vmatprep.subr.bf16.mxu0 %v6243_v19  ;;  %v6330_v30 = vld [vmem:[%s8308_s3 + $0xf4c] ss:$16 sps:$4 sm:$0xff]   ;;  %v6325_v19 = vld [vmem:[%s8308_s3 + $0xf40] ss:$16 sps:$4 sm:$0xff]  }
 0x256   :  { %4438 = vmatprep.subr.bf16.mxu1 %v6246_v24  ;;  %v6328_v24 = vld [vmem:[%s8308_s3 + $0xf48] ss:$16 sps:$4 sm:$0xff]  }
 0x258   :  { %4095 = vmatpush1.bf16.msra.mxu0 %v6241_v27  ;;  %v6333_v27 = vld [vmem:[%s8308_s3 + $0xf64] ss:$16 sps:$4 sm:$0xff]  }
 0x259   :  { %4439 = vmatpush1.bf16.msra.mxu1 %v6244_v34  ;;  %4096 = vmatprep.subr.bf16.mxu0 %v6249_v35  ;;  %v6336_v34 = vld [vmem:[%s8308_s3 + $0xf6c] ss:$16 sps:$4 sm:$0xff]   ;;  %v6331_v35 = vld [vmem:[%s8308_s3 + $0xf60] ss:$16 sps:$4 sm:$0xff]  }
 0x25a   :  { %4440 = vmatprep.subr.bf16.mxu1 %v6252_v36  ;;  %v6334_v36 = vld [vmem:[%s8308_s3 + $0xf68] ss:$16 sps:$4 sm:$0xff]  }
 0x25c   :  { %4097 = vmatpush1.bf16.msra.mxu0 %v6247_v23  ;;  %v6339_v23 = vld [vmem:[%s8308_s3 + $0xf84] ss:$16 sps:$4 sm:$0xff]  }
 0x25d   :  { %4441 = vmatpush1.bf16.msra.mxu1 %v6250_v37  ;;  %4098 = vmatprep.subr.bf16.mxu0 %v6255_v38  ;;  %v6342_v37 = vld [vmem:[%s8308_s3 + $0xf8c] ss:$16 sps:$4 sm:$0xff]   ;;  %v6337_v38 = vld [vmem:[%s8308_s3 + $0xf80] ss:$16 sps:$4 sm:$0xff]  }
 0x25e   :  { %4442 = vmatprep.subr.bf16.mxu1 %v6258_v39  ;;  %v6340_v39 = vld [vmem:[%s8308_s3 + $0xf88] ss:$16 sps:$4 sm:$0xff]  }
 0x260   :  { %4099 = vmatpush1.bf16.msra.mxu0 %v6253_v41  ;;  %v6345_v41 = vld [vmem:[%s8308_s3 + $0xfa4] ss:$16 sps:$4 sm:$0xff]  }
 0x261   :  { %4443 = vmatpush1.bf16.msra.mxu1 %v6256_v42  ;;  %4100 = vmatprep.subr.bf16.mxu0 %v6261_v63  ;;  %v6348_v42 = vld [vmem:[%s8308_s3 + $0xfac] ss:$16 sps:$4 sm:$0xff]   ;;  %v6343_v63 = vld [vmem:[%s8308_s3 + $0xfa0] ss:$16 sps:$4 sm:$0xff]  }
 0x262   :  { %4444 = vmatprep.subr.bf16.mxu1 %v6264_v44  ;;  %v6346_v44 = vld [vmem:[%s8308_s3 + $0xfa8] ss:$16 sps:$4 sm:$0xff]  }
 0x264   :  { %4101 = vmatpush1.bf16.msra.mxu0 %v6259_v45  ;;  %v6351_v45 = vld [vmem:[%s8308_s3 + $0xfc4] ss:$16 sps:$4 sm:$0xff]  }
 0x265   :  { %4445 = vmatpush1.bf16.msra.mxu1 %v6262_v48  ;;  %4113 = vmatprep.subr.bf16.mxu0 %v6267_v33  ;;  %v6354_v48 = vld [vmem:[%s8308_s3 + $0xfcc] ss:$16 sps:$4 sm:$0xff]   ;;  %v6349_v33 = vld [vmem:[%s8308_s3 + $0xfc0] ss:$16 sps:$4 sm:$0xff]  }
 0x266   :  { %4457 = vmatprep.subr.bf16.mxu1 %v6270_v49  ;;  %v6352_v49 = vld [vmem:[%s8308_s3 + $0xfc8] ss:$16 sps:$4 sm:$0xff]  }
 0x267   :  { %4103 = vmatmul.mubr.bf16.vlgmr.msra.gmra.mrb[16].mxu0 %v736_v52 }
 0x268   :  { %4447 = vmatmul.mubr.bf16.vlgmr.msra.gmra.mrb[16].mxu1 %v736_v52  ;;  %4114 = vmatpush1.bf16.msra.mxu0 %v6265_v21  ;;  %v6357_v21 = vld [vmem:[%s8308_s3 + $0xfe4] ss:$16 sps:$4 sm:$0xff]   ;;  %v6360_v52 = vld [vmem:[%s8308_s3 + $0xfec] ss:$16 sps:$4 sm:$0xff]  }
 0x269   :  { %4145 = vmatprep.mubr.bf16.mxu0 %v739_v57  ;;  %4458 = vmatpush1.bf16.msra.mxu1 %v6268_v54  ;;  %v6355_v54 = vld [vmem:[%s8308_s3 + $0xfe0] ss:$16 sps:$4 sm:$0xff]  }
 0x26a   :  { %4489 = vmatprep.mubr.bf16.mxu1 %v739_v57  ;;  %4115 = vmatprep.subr.bf16.mxu0 %v6273_v56  ;;  %v6358_v56 = vld [vmem:[%s8308_s3 + $0xfe8] ss:$16 sps:$4 sm:$0xff]   ;;  %v6361_v57 = vld [vmem:[%s8310_s5 + $0x40] sm:$0xff]  }
 0x26b   :  { %4459 = vmatprep.subr.bf16.mxu1 %v6276_v59  ;;  %v6362_v59 = vld [vmem:[%s8310_s5 + $0xc0] sm:$0xff]  }
 0x26c   :  { %4116 = vmatpush1.bf16.msra.mxu0 %v6271_v12  ;;  %v6363_v12 = vld [vmem:[%s8310_s5] sm:$0xff]  }
 0x26d   :  { %4460 = vmatpush1.bf16.msra.mxu1 %v6274_v60  ;;  %4117 = vmatprep.subr.bf16.mxu0 %v6279_v29  ;;  %v738_v60 = vmax.bf16 %v6393_v2, %v6890_v22  ;;  %v6364_v29 = vld [vmem:[%s8310_s5 + $0x80] sm:$0xff]   ;;  %v6367_v22 = vld [vmem:[%s8310_s5 + $0x8] sm:$0xff]  }
 0x26e   :  { %4461 = vmatprep.subr.bf16.mxu1 %v6282_v53  ;;  %v6365_v53 = vld [vmem:[%s8310_s5 + $0x48] sm:$0xff]  }
 0x270   :  { %4118 = vmatpush1.bf16.msra.mxu0 %v6277_v62  ;;  %v6366_v62 = vld [vmem:[%s8310_s5 + $0xc8] sm:$0xff]  }
 0x271   :  { %4462 = vmatpush1.bf16.msra.mxu1 %v6280_v0  ;;  %4119 = vmatprep.subr.bf16.mxu0 %v6285_v1  ;;  %v6368_v0 = vld [vmem:[%s8310_s5 + $0x88] sm:$0xff]   ;;  %v6369_v1 = vld [vmem:[%s8310_s5 + $0x50] sm:$0xff]  }
 0x272   :  { %4463 = vmatprep.subr.bf16.mxu1 %v6288_v32  ;;  %v6370_v32 = vld [vmem:[%s8310_s5 + $0xd0] sm:$0xff]  }
 0x274   :  { %4120 = vmatpush1.bf16.msra.mxu0 %v6283_v40  ;;  %v6371_v40 = vld [vmem:[%s8310_s5 + $0x10] sm:$0xff]  }
 0x275   :  { %4464 = vmatpush1.bf16.msra.mxu1 %v6286_v47  ;;  %4121 = vmatprep.subr.bf16.mxu0 %v6291_v31  ;;  %v6372_v47 = vld [vmem:[%s8310_s5 + $0x90] sm:$0xff]   ;;  %v6373_v31 = vld [vmem:[%s8310_s5 + $0x58] sm:$0xff]  }
 0x276   :  { %4465 = vmatprep.subr.bf16.mxu1 %v6294_v5  ;;  %v6374_v5 = vld [vmem:[%s8310_s5 + $0xd8] sm:$0xff]  }
 0x278   :  { %4122 = vmatpush1.bf16.msra.mxu0 %v6289_v46  ;;  %v6375_v46 = vld [vmem:[%s8310_s5 + $0x18] sm:$0xff]  }
 0x279   :  { %4466 = vmatpush1.bf16.msra.mxu1 %v6292_v7  ;;  %4123 = vmatprep.subr.bf16.mxu0 %v6297_v9  ;;  %v6376_v7 = vld [vmem:[%s8310_s5 + $0x98] sm:$0xff]   ;;  %v6377_v9 = vld [vmem:[%s8310_s5 + $0x60] sm:$0xff]  }
 0x27a   :  { %4467 = vmatprep.subr.bf16.mxu1 %v6300_v10  ;;  %v6378_v10 = vld [vmem:[%s8310_s5 + $0xe0] sm:$0xff]  }
 0x27c   :  { %4124 = vmatpush1.bf16.msra.mxu0 %v6295_v11  ;;  %v6379_v11 = vld [vmem:[%s8310_s5 + $0x20] sm:$0xff]  }
 0x27d   :  { %4468 = vmatpush1.bf16.msra.mxu1 %v6298_v58  ;;  %4125 = vmatprep.subr.bf16.mxu0 %v6303_v13  ;;  %v6380_v58 = vld [vmem:[%s8310_s5 + $0xa0] sm:$0xff]   ;;  %v6381_v13 = vld [vmem:[%s8310_s5 + $0x68] sm:$0xff]  }
 0x27e   :  { %4469 = vmatprep.subr.bf16.mxu1 %v6306_v14  ;;  %v6382_v14 = vld [vmem:[%s8310_s5 + $0xe8] sm:$0xff]  }
 0x280   :  { %4126 = vmatpush1.bf16.msra.mxu0 %v6301_v15  ;;  %v6383_v15 = vld [vmem:[%s8310_s5 + $0x28] sm:$0xff]  }
 0x281   :  { %4470 = vmatpush1.bf16.msra.mxu1 %v6304_v16  ;;  %4127 = vmatprep.subr.bf16.mxu0 %v6309_v17  ;;  %v6384_v16 = vld [vmem:[%s8310_s5 + $0xa8] sm:$0xff]   ;;  %v6385_v17 = vld [vmem:[%s8310_s5 + $0x70] sm:$0xff]  }
 0x282   :  { %4471 = vmatprep.subr.bf16.mxu1 %v6312_v18  ;;  %v6386_v18 = vld [vmem:[%s8310_s5 + $0xf0] sm:$0xff]  }
 0x284   :  { %4128 = vmatpush1.bf16.msra.mxu0 %v6307_v20  ;;  %v6387_v20 = vld [vmem:[%s8310_s5 + $0x30] sm:$0xff]  }
 0x285   :  { %4472 = vmatpush1.bf16.msra.mxu1 %v6310_v25  ;;  %4129 = vmatprep.subr.bf16.mxu0 %v6315_v26  ;;  %v6388_v25 = vld [vmem:[%s8310_s5 + $0xb0] sm:$0xff]   ;;  %v6389_v26 = vld [vmem:[%s8310_s5 + $0x78] sm:$0xff]  }
 0x286   :  { %4473 = vmatprep.subr.bf16.mxu1 %v6318_v28  ;;  %v6390_v28 = vld [vmem:[%s8310_s5 + $0xf8] sm:$0xff]  }
 0x288   :  { %4130 = vmatpush1.bf16.msra.mxu0 %v6313_v55  ;;  %v6391_v55 = vld [vmem:[%s8310_s5 + $0x38] sm:$0xff]  }
 0x289   :  { %4474 = vmatpush1.bf16.msra.mxu1 %v6316_v4  ;;  %4131 = vmatprep.subr.bf16.mxu0 %v6321_v50  ;;  %v6392_v4 = vld [vmem:[%s8310_s5 + $0xb8] sm:$0xff]   ;;  %v5454_v50 = vld.sshfl [vmem:[%s8311_s4] sm:$0x33 pattern:$0x75316420] }
 0x28a   :  { %4475 = vmatprep.subr.bf16.mxu1 %v6324_v8  ;;  %v4513_v8 = vcombine.high %v5454_v50, %v5454_v50 }
 0x28c   :  { %4132 = vmatpush1.bf16.msra.mxu0 %v6319_v61  ;;  %v4520_v61 = vrot.slane %v5454_v50, %v6713_v43 }
 0x28d   :  { %4476 = vmatpush1.bf16.msra.mxu1 %v6322_v3  ;;  %4133 = vmatprep.subr.bf16.mxu0 %v6327_v6  ;;  %v4527_v3 = vrot.slane %v4513_v8, %v6713_v43 }
 0x28e   :  { %4477 = vmatprep.subr.bf16.mxu1 %v6330_v30  ;;  %v4528_v6 = vcombine.high %v4520_v61, %v4520_v61 }
 0x28f   :  { %v4529_v30 = vcombine.high %v4527_v3, %v4527_v3 }
 0x290   :  { %4134 = vmatpush1.bf16.msra.mxu0 %v6325_v19  ;;  %v4531_v19 = vpack.i.b16 %v4520_v61, %v4520_v61 }
 0x291   :  { %4478 = vmatpush1.bf16.msra.mxu1 %v6328_v24  ;;  %4135 = vmatprep.subr.bf16.mxu0 %v6333_v27  ;;  %v4545_v24 = vpack.i.b16 %v4528_v6, %v4528_v6  ;;  %v4538_v27 = vpack.i.b16 %v4527_v3, %v4527_v3 }
 0x292   :  { %4479 = vmatprep.subr.bf16.mxu1 %v6336_v34  ;;  %v4552_v34 = vpack.i.b16 %v4529_v30, %v4529_v30 }
 0x294   :  { %4136 = vmatpush1.bf16.msra.mxu0 %v6331_v35 }
 0x295   :  { %4480 = vmatpush1.bf16.msra.mxu1 %v6334_v36  ;;  %4137 = vmatprep.subr.bf16.mxu0 %v6339_v23 }
 0x296   :  { %4481 = vmatprep.subr.bf16.mxu1 %v6342_v37  ;;  %v4536_v37 = vrot.slane %v4531_v19, %v6722_v51 }
 0x298   :  { %4138 = vmatpush1.bf16.msra.mxu0 %v6337_v38 }
 0x299   :  { %4482 = vmatpush1.bf16.msra.mxu1 %v6340_v39  ;;  %4139 = vmatprep.subr.bf16.mxu0 %v6345_v41  ;;  %v4550_v41 = vrot.slane %v4545_v24, %v6722_v51 }
 0x29a   :  { %4483 = vmatprep.subr.bf16.mxu1 %v6348_v42  ;;  %v4543_v42 = vrot.slane %v4538_v27, %v6722_v51 }
 0x29c   :  { %4140 = vmatpush1.bf16.msra.mxu0 %v6343_v63 }
 0x29d   :  { %4484 = vmatpush1.bf16.msra.mxu1 %v6346_v44  ;;  %4141 = vmatprep.subr.bf16.mxu0 %v6351_v45  ;;  %v4557_v45 = vrot.slane %v4552_v34, %v6722_v51 }
 0x29e   :  { %4485 = vmatprep.subr.bf16.mxu1 %v6354_v48 }
 0x2a0   :  { %4142 = vmatpush1.bf16.msra.mxu0 %v6349_v33 }
 0x2a1   :  { %4486 = vmatpush1.bf16.msra.mxu1 %v6352_v49  ;;  %4143 = vmatprep.subr.bf16.mxu0 %v6357_v21 }
 0x2a2   :  { %4487 = vmatprep.subr.bf16.mxu1 %v6360_v52 }
 0x2a4   :  { %4144 = vmatpush1.bf16.msra.mxu0 %v6355_v54 }
 0x2a5   :  { %4488 = vmatpush1.bf16.msra.mxu1 %v6358_v56  ;;  %5488 = vmatprep.subr.bf16.mxu0 %v6361_v57 }
 0x2a6   :  { %5510 = vmatprep.subr.bf16.mxu1 %v6362_v59 }
 0x2a7   :  { %4146 = vmatmul.mubr.bf16.vlgmr.msra.gmra.mrb[16].mxu0 %v738_v60 }
 0x2a8   :  { %4490 = vmatmul.mubr.bf16.vlgmr.msra.gmra.mrb[16].mxu1 %v738_v60  ;;  %5489 = vmatpush3.bf16.msra.mxu0 %v6363_v12 }
 0x2a9   :  { %5511 = vmatpush3.bf16.msra.mxu1 %v6364_v29  ;;  %5490 = vmatprep.subr.bf16.mxu0 %v6365_v53 }
 0x2aa   :  { %5512 = vmatprep.subr.bf16.mxu1 %v6366_v62  ;;  %v5455_v62 = vld [vmem:[%s8312_s6] ss:$0 sm:$0xff] }
 0x2ac   :  { %5491 = vmatpush3.bf16.msra.mxu0 %v6367_v22 }
 0x2ad   :  { %5513 = vmatpush3.bf16.msra.mxu1 %v6368_v0  ;;  %5492 = vmatprep.subr.bf16.mxu0 %v6369_v1 }
 0x2ae   :  { %5514 = vmatprep.subr.bf16.mxu1 %v6370_v32 }
 0x2b0   :  { %5493 = vmatpush3.bf16.msra.mxu0 %v6371_v40 }
 0x2b1   :  { %5515 = vmatpush3.bf16.msra.mxu1 %v6372_v47  ;;  %5494 = vmatprep.subr.bf16.mxu0 %v6373_v31 }
 0x2b2   :  { %5516 = vmatprep.subr.bf16.mxu1 %v6374_v5 }
 0x2b4   :  { %5495 = vmatpush3.bf16.msra.mxu0 %v6375_v46 }
 0x2b5   :  { %5517 = vmatpush3.bf16.msra.mxu1 %v6376_v7  ;;  %5496 = vmatprep.subr.bf16.mxu0 %v6377_v9 }
 0x2b6   :  { %5518 = vmatprep.subr.bf16.mxu1 %v6378_v10 }
 0x2b8   :  { %5497 = vmatpush3.bf16.msra.mxu0 %v6379_v11 }
 0x2b9   :  { %5519 = vmatpush3.bf16.msra.mxu1 %v6380_v58  ;;  %5498 = vmatprep.subr.bf16.mxu0 %v6381_v13 }
 0x2ba   :  { %5520 = vmatprep.subr.bf16.mxu1 %v6382_v14 }
 0x2bc   :  { %5499 = vmatpush3.bf16.msra.mxu0 %v6383_v15 }
 0x2bd   :  { %5521 = vmatpush3.bf16.msra.mxu1 %v6384_v16  ;;  %5500 = vmatprep.subr.bf16.mxu0 %v6385_v17 }
 0x2be   :  { %5522 = vmatprep.subr.bf16.mxu1 %v6386_v18 }
 0x2c0   :  { %5501 = vmatpush3.bf16.msra.mxu0 %v6387_v20 }
 0x2c1   :  { %5523 = vmatpush3.bf16.msra.mxu1 %v6388_v25  ;;  %5502 = vmatprep.subr.bf16.mxu0 %v6389_v26 }
 0x2c2   :  { %5524 = vmatprep.subr.bf16.mxu1 %v6390_v28 }
 0x2c4   :  { %5503 = vmatpush3.bf16.msra.mxu0 %v6391_v55 }
 0x2c5   :  { %5525 = vmatpush3.bf16.msra.mxu1 %v6392_v4 }
 0x37a   :  { %v4147_v35 = vpop.f32.mrb[16].mxu0 }
 0x37b   :  { %v4491_v36 = vpop.f32.mrb[16].mxu1  ;;  %v4149_v23 = vpop.f32.mrb[17].mxu0 }
 0x37c   :  { %v4493_v38 = vpop.f32.mrb[17].mxu1  ;;  %v4151_v39 = vpop.f32.mrb[18].mxu0 }
 0x37d   :  { %v4500_v63 = vpack.c.bf16 %v4151_v39, %v4147_v35  ;;  %v4495_v44 = vpop.f32.mrb[18].mxu1  ;;  %v4153_v43 = vpop.f32.mrb[19].mxu0 }
 0x37e   :  { %v4502_v48 = vpack.c.bf16 %v4495_v44, %v4491_v36  ;;  %v4501_v33 = vpack.c.bf16 %v4153_v43, %v4149_v23  ;;  %v4497_v49 = vpop.f32.mrb[19].mxu1 }
 0x37f   :  { %v4558_v21 = vadd.bf16 %v4536_v37, %v4500_v63  ;;  %v4503_v52 = vpack.c.bf16 %v4497_v49, %v4493_v38 }
 0x380   :  { %v4560_v54 = vadd.bf16 %v4550_v41, %v4502_v48  ;;  %v4559_v56 = vadd.bf16 %v4543_v42, %v4501_v33 }
 0x381   :  { %v4561_v57 = vadd.bf16 %v4557_v45, %v4503_v52  ;;  %v4562_v12 = vmax.bf16 %v6393_v2, %v4558_v21 }
 0x382   :  { %v4563_v59 = vmax.bf16 %v6393_v2, %v4559_v56  ;;  %v4564_v29 = vmax.bf16 %v6393_v2, %v4560_v54 }
 0x383   :  { %v4565_v60 = vmax.bf16 %v6393_v2, %v4561_v57 }
 0x384   :  { %4861 = vmatprep.mubr.bf16.mxu0 %v4563_v59 }
 0x385   :  { %4902 = vmatprep.mubr.bf16.mxu1 %v4565_v60  ;;  %4862 = vmatmul.mubr.bf16.vlgmr.msra.gmra.mrb[20].mxu0 %v4562_v12 }
 0x386   :  { %4903 = vmatmul.mubr.bf16.vlgmr.msra.gmra.mrb[20].mxu1 %v4564_v29 }
 0x458   :  { %v5504_v51 = vpop.f32.mrb[20].mxu0 }
 0x459   :  { %v5526_v53 = vpop.f32.mrb[20].mxu1  ;;  %v5505_v22 = vpop.f32.mrb[21].mxu0 }
 0x45a   :  { %v5506_v0 = vadd.f32 %v5505_v22, %v5504_v51  ;;  %v5527_v1 = vpop.f32.mrb[21].mxu1  ;;  %v5507_v32 = vpop.f32.mrb[22].mxu0 }
 0x45b   :  { %v5528_v40 = vadd.f32 %v5527_v1, %v5526_v53  ;;  %v5529_v47 = vpop.f32.mrb[22].mxu1  ;;  %v5508_v31 = vpop.f32.mrb[23].mxu0 }
 0x45c   :  { %v4864_v5 = vadd.f32 %v5506_v0, %v5455_v62  ;;  %v5509_v46 = vadd.f32 %v5508_v31, %v5507_v32  ;;  %v5530_v2 = vpop.f32.mrb[23].mxu1 }
 0x45d   :  { %v5531_v7 = vadd.f32 %v5530_v2, %v5529_v47 }
 0x45e   :  { %v4905_v9 = vadd.f32 %v5528_v40, %v4864_v5  ;;  %v4867_v10 = vadd.f32 %v5509_v46, %v5455_v62 }
 0x460   :  { %4911 = vst [vmem:[%s8313_s7] sm:$0xff] %v4905_v9  ;;  %v4908_v11 = vadd.f32 %v5531_v7, %v4867_v10 }
 0x462   :  { %4912 = vst [vmem:[%s8313_s7 + $0x8] sm:$0xff] %v4908_v11 }

</bundles_post_ra>
